<compile_context>
chip_gen: v7x
topology: tpu7x:2x2x1
jax: 0.10.0
libtpu: 0.0.40
codegen_flags: <defaults>
</compile_context>

<pallas_src>
import functools

import jax
import jax.numpy as jnp
from jax.experimental import pallas as pl
from jax.experimental.pallas import tpu as pltpu

MXU_DTYPE = jnp.bfloat16      # matmul operand dtype (accumulate in f32)
BN_EPS = 1e-5

COMPILER_PARAMS = pltpu.CompilerParams(
    dimension_semantics=("parallel",),          # batch axis -> both TCs on v7x
    vmem_limit_bytes=32 * 1024 * 1024,          # headroom above v5e's 16 MiB default
)


def _round_up(x, m):
    return (x + m - 1) // m * m


# ----------------------------- Pallas kernels ------------------------------

def _conv_kernel(x_ref, w_ref, b_ref, o_ref, st_ref, *, taps, Ws, Wo, Ho, Lw):
    """One image per grid step.

    x_ref : (P, Cin, L)   bf16  stride-phase-decomposed, flattened, padded input
    w_ref : (T, Cout, Cin) bf16 per-tap weight matrices
    b_ref : (Cout, 1)     f32   bias
    o_ref : (Cout, Ho*Wo) f32   dense conv+bias output (channel-major, lanes=HW)
    st_ref: (Cout, 2)     f32   per-image (sum, sum_of_squares) for BatchNorm
    """
    acc = None
    # im2col entirely in VMEM: each tap is a contiguous lane slice of a phase.
    for t, p, off in taps:                                   # static unroll
        a = x_ref[p, :, off:off + Lw]                        # (Cin, Lw) bf16
        contrib = jnp.dot(w_ref[t], a, preferred_element_type=jnp.float32)
        acc = contrib if acc is None else acc + contrib
    acc = acc + b_ref[...]                                   # (Cout, Lw) f32

    c = acc.shape[0]
    s1 = jnp.zeros((c, 1), jnp.float32)
    s2 = jnp.zeros((c, 1), jnp.float32)
    # Compact the "wide" rows (width Ws) to the valid width Wo and accumulate
    # the BN statistics from the same values (no extra HBM pass).
    for r in range(Ho):                                      # static unroll
        row = acc[:, r * Ws:r * Ws + Wo]                     # (Cout, Wo)
        o_ref[:, r * Wo:(r + 1) * Wo] = row
        s1 = s1 + jnp.sum(row, axis=-1, keepdims=True)
        s2 = s2 + jnp.sum(row * row, axis=-1, keepdims=True)
    st_ref[:, 0:1] = s1
    st_ref[:, 1:2] = s2


def _bn_add_relu_kernel(y_ref, r_ref, ss_ref, o_ref):
    """BN2(scale/shift) + identity-residual add + ReLU (all f32)."""
    scale = ss_ref[:, 0:1]
    shift = ss_ref[:, 1:2]
    o_ref[...] = jnp.maximum(y_ref[...] * scale + shift + r_ref[...], 0.0)


def _bn_dsconv_add_relu_kernel(y_ref, xs_ref, wd_ref, bd_ref, ss_ref, o_ref):
    """Fused 1x1-downsample conv (MXU) + BN2(scale/shift) + add + ReLU."""
    scale = ss_ref[:, 0:1]
    shift = ss_ref[:, 1:2]
    shortcut = jnp.dot(wd_ref[...], xs_ref[...],
                       preferred_element_type=jnp.float32) + bd_ref[...]
    o_ref[...] = jnp.maximum(y_ref[...] * scale + shift + shortcut, 0.0)


# ------------------------------ conv wrapper --------------------------------

def _prep_conv_input(x, kh, kw, stride, padding):
    """NCHW -> (N, P, Cin, L) bf16 phase-decomposed, flattened, tail-padded input.

    Stride phases: tap (i, j) lives in phase (i % sh, j % sw) at row/col offset
    (i // sh, j // sw), so in-kernel tap extraction is a *contiguous* slice of
    the flattened phase (the "wide" trick: the kernel computes Ws columns per
    output row and drops the Ws-Wo junk columns when compacting).
    """
    N, Cin, H, W = x.shape
    sh, sw = stride
    ph, pw = padding
    Ho = (H + 2 * ph - kh) // sh + 1
    Wo = (W + 2 * pw - kw) // sw + 1
    Hp = _round_up(H + 2 * ph, sh)
    Wp = _round_up(W + 2 * pw, sw)
    xp = jnp.pad(x, ((0, 0), (0, 0), (ph, Hp - H - ph), (pw, Wp - W - pw)))
    Hs, Ws = Hp // sh, Wp // sw
    phases = [xp[:, :, p::sh, q::sw] for p in range(sh) for q in range(sw)]
    xf = jnp.stack(phases, axis=1).reshape(N, sh * sw, Cin, Hs * Ws)

    Lw = Ho * Ws
    taps = []
    for i in range(kh):
        for j in range(kw):
            taps.append((i * kw + j,
                         (i % sh) * sw + (j % sw),
                         (i // sh) * Ws + (j // sw)))
    max_off = max(t[2] for t in taps)
    L = _round_up(max(Hs * Ws, max_off + Lw), 128)           # lane-friendly length
    xf = jnp.pad(xf, ((0, 0), (0, 0), (0, 0), (0, L - Hs * Ws)))
    geom = dict(taps=taps, Ws=Ws, Wo=Wo, Ho=Ho, Lw=Lw)
    return xf.astype(MXU_DTYPE), geom


def conv2d_bias(x, w, b, stride, padding):
    """Fused im2col-in-VMEM conv + bias.

    Returns (dense output (N, Cout, Ho*Wo) f32,
             per-image channel stats (N, Cout, 2) f32, (Ho, Wo)).
    """
    N, Cin, H, W = x.shape
    Cout, _, kh, kw = w.shape
    xf, geom = _prep_conv_input(x, kh, kw, stride, padding)
    P, L = xf.shape[1], xf.shape[3]
    Ho, Wo = geom["Ho"], geom["Wo"]

    w_taps = jnp.transpose(w, (2, 3, 0, 1)).reshape(kh * kw, Cout, Cin)
    w_taps = w_taps.astype(MXU_DTYPE)
    b2 = b.reshape(Cout, 1).astype(jnp.float32)

    # TODO(synk): for large spatial extents, tile Ho across the grid with a
    # halo-aware manual DMA instead of whole-image blocks (VMEM limit).
    out, stats = pl.pallas_call(
        functools.partial(_conv_kernel, **geom),
        out_shape=(jax.ShapeDtypeStruct((N, Cout, Ho * Wo), jnp.float32),
                   jax.ShapeDtypeStruct((N, Cout, 2), jnp.float32)),
        grid=(N,),
        in_specs=[pl.BlockSpec((None, P, Cin, L), lambda n: (n, 0, 0, 0)),
                  pl.BlockSpec((kh * kw, Cout, Cin), lambda n: (0, 0, 0)),
                  pl.BlockSpec((Cout, 1), lambda n: (0, 0))],
        out_specs=(pl.BlockSpec((None, Cout, Ho * Wo), lambda n: (n, 0, 0)),
                   pl.BlockSpec((None, Cout, 2), lambda n: (n, 0, 0))),
        compiler_params=COMPILER_PARAMS,
    )(xf, w_taps, b2)
    return out, stats, (Ho, Wo)


def _bn_fold(stats, gamma, beta, count, eps=BN_EPS):
    """Fold training-mode BatchNorm (batch stats, biased var) + affine params
    into a packed per-channel (scale, shift) pair.  Tiny C-sized math."""
    s = jnp.sum(stats, axis=0)                       # (C, 2)
    mean = s[:, 0] / count
    var = jnp.maximum(s[:, 1] / count - mean * mean, 0.0)
    invstd = 1.0 / jnp.sqrt(var + eps)
    scale = gamma * invstd
    shift = beta - mean * scale
    return jnp.stack([scale, shift], axis=-1)        # (C, 2)


def bn_add_relu(y, shortcut, ss):
    N, C, M = y.shape
    return pl.pallas_call(
        _bn_add_relu_kernel,
        out_shape=jax.ShapeDtypeStruct((N, C, M), jnp.float32),
        grid=(N,),
        in_specs=[pl.BlockSpec((None, C, M), lambda n: (n, 0, 0)),
                  pl.BlockSpec((None, C, M), lambda n: (n, 0, 0)),
                  pl.BlockSpec((C, 2), lambda n: (0, 0))],
        out_specs=pl.BlockSpec((None, C, M), lambda n: (n, 0, 0)),
        compiler_params=COMPILER_PARAMS,
    )(y, shortcut, ss)


def bn_dsconv_add_relu(y, x_sub, w_ds, b_ds, ss):
    N, C, M = y.shape
    Cin = x_sub.shape[1]
    return pl.pallas_call(
        _bn_dsconv_add_relu_kernel,
        out_shape=jax.ShapeDtypeStruct((N, C, M), jnp.float32),
        grid=(N,),
        in_specs=[pl.BlockSpec((None, C, M), lambda n: (n, 0, 0)),
                  pl.BlockSpec((None, Cin, M), lambda n: (n, 0, 0)),
                  pl.BlockSpec((C, Cin), lambda n: (0, 0)),
                  pl.BlockSpec((C, 1), lambda n: (0, 0)),
                  pl.BlockSpec((C, 2), lambda n: (0, 0))],
        out_specs=pl.BlockSpec((None, C, M), lambda n: (n, 0, 0)),
        compiler_params=COMPILER_PARAMS,
    )(y, x_sub, w_ds, b_ds, ss)


# ------------------------------ Resid_block ---------------------------------

def resid_block(x, params, stride=(1, 1), padding=(1, 1)):
    """Forward pass of the PyTorch Resid_block.

    BatchNorm is evaluated in training mode (batch statistics, biased
    variance), matching a freshly constructed nn.BatchNorm2d in forward.
    """
    w1, b1 = params["conv1"]
    w2, b2 = params["conv2"]
    g1, be1 = params["bn1"]
    g2, be2 = params["bn2"]
    N = x.shape[0]
    C = w1.shape[0]

    # conv1 (+bias); per-channel sum/sumsq come out of the same kernel pass.
    y1, st1, (ho1, wo1) = conv2d_bias(x, w1, b1, stride, padding)
    ss1 = _bn_fold(st1, g1, be1, N * ho1 * wo1)

    # BN1-apply + ReLU folded into the (small, XLA-fused) conv2 input prep.
    # TODO(synk): for large activations move this re-layout into a Pallas kernel.
    a1 = jnp.maximum(y1 * ss1[:, 0][None, :, None] + ss1[:, 1][None, :, None], 0.0)
    a1 = a1.reshape(N, C, ho1, wo1)

    # conv2 (+bias) and BN2 statistics, same fused single pass.
    y2, st2, (ho2, wo2) = conv2d_bias(a1, w2, b2, (1, 1), (1, 1))
    ss2 = _bn_fold(st2, g2, be2, N * ho2 * wo2)

    ds = params.get("downsample")
    if ds is not None:
        # Fused epilogue: 1x1 downsample conv + BN2 + residual add + ReLU.
        wd, bd = ds
        sh, sw = stride
        cin = x.shape[1]
        x_sub = x[:, :, ::sh, ::sw][:, :, :ho2, :wo2].reshape(N, cin, ho2 * wo2)
        out = bn_dsconv_add_relu(
            y2, x_sub.astype(MXU_DTYPE),
            wd.reshape(C, cin).astype(MXU_DTYPE),
            bd.reshape(C, 1).astype(jnp.float32), ss2)
    else:
        assert x.shape[1] == C and x.shape[2] * x.shape[3] == ho2 * wo2, \
            "identity shortcut requires matching shapes"
        out = bn_add_relu(y2, x.reshape(N, C, ho2 * wo2), ss2)
    return out.reshape(N, C, ho2, wo2)


# --------------------------- params & test driver ---------------------------

def _init_conv(key, cout, cin, kh, kw):
    k_w, k_b = jax.random.split(key)
    fan_in = cin * kh * kw
    bound = 1.0 / (fan_in ** 0.5)
    w = jax.random.uniform(k_w, (cout, cin, kh, kw), jnp.float32, -bound, bound)
    b = jax.random.uniform(k_b, (cout,), jnp.float32, -bound, bound)
    return w, b


def init_resid_block(key, cin, cout, with_downsample):
    ks = jax.random.split(key, 3)
    p = dict(
        conv1=_init_conv(ks[0], cout, cin, 3, 3),
        conv2=_init_conv(ks[1], cout, cout, 3, 3),
        bn1=(jnp.ones((cout,), jnp.float32), jnp.zeros((cout,), jnp.float32)),
        bn2=(jnp.ones((cout,), jnp.float32), jnp.zeros((cout,), jnp.float32)),
    )
    if with_downsample:
        p["downsample"] = _init_conv(ks[2], cout, cin, 1, 1)   # 1x1 conv shortcut
    return p


if __name__ == "__main__":
    key = jax.random.PRNGKey(0)
    k1, k2, kx = jax.random.split(key, 3)

    # Case 1: stride-2 block with a 1x1-conv downsample (4 -> 8 ch, 16x16 -> 8x8).
    x = jax.random.normal(kx, (2, 4, 16, 16), jnp.float32)
    p1 = init_resid_block(k1, 4, 8, with_downsample=True)
    f1 = jax.jit(functools.partial(resid_block, params=p1,
                                   stride=(2, 2), padding=(1, 1)))
    y1 = f1(x)
    jax.block_until_ready(y1)
    assert y1.shape == (2, 8, 8, 8), y1.shape
    assert bool(jnp.all(jnp.isfinite(y1)))
    assert bool(jnp.all(y1 >= 0.0))

    # Case 2: default Resid_block (stride 1, identity shortcut, 8 -> 8 channels).
    p2 = init_resid_block(k2, 8, 8, with_downsample=False)
    f2 = jax.jit(functools.partial(resid_block, params=p2,
                                   stride=(1, 1), padding=(1, 1)))
    y2 = f2(y1)
    jax.block_until_ready(y2)
    assert y2.shape == (2, 8, 8, 8), y2.shape
    assert bool(jnp.all(jnp.isfinite(y2)))

    print("KERNEL_OK")
</pallas_src>

<mosaic_0001>
module attributes {stable_mosaic.version = 11 : i64} {
  func.func @_conv_kernel(%arg0: i32, %arg1: memref<1x4x4x128xbf16, #tpu.memory_space<vmem>>, %arg2: memref<9x8x4xbf16, #tpu.memory_space<vmem>>, %arg3: memref<8x1xf32, #tpu.memory_space<vmem>>, %arg4: memref<1x8x64xf32, #tpu.memory_space<vmem>>, %arg5: memref<1x8x2xf32, #tpu.memory_space<vmem>>) attributes {dimension_semantics = [#tpu.dimension_semantics<parallel>], iteration_bounds = array<i64: 2>, scalar_prefetch = 0 : i64, scratch_operands = 0 : i64, tpu.core_type = #tpu.core_type<tc>, window_params = [{transform_indices = @transform_0, window_bounds = array<i64: 1, 4, 4, 128>}, {pipeline_mode = #tpu.pipeline_mode<synchronous>, transform_indices = @transform_1, window_bounds = array<i64: 9, 8, 4>}, {pipeline_mode = #tpu.pipeline_mode<synchronous>, transform_indices = @transform_2, window_bounds = array<i64: 8, 1>}, {transform_indices = @transform_3, window_bounds = array<i64: 1, 8, 64>}, {transform_indices = @transform_4, window_bounds = array<i64: 1, 8, 2>}]} {
    %c0 = arith.constant 0 : index
    %c0_0 = arith.constant 0 : index
    %c0_1 = arith.constant 0 : index
    %c0_2 = arith.constant 0 : index
    %0 = vector.load %arg1[%c0, %c0_0, %c0_1, %c0_2] : memref<1x4x4x128xbf16, #tpu.memory_space<vmem>>, vector<1x1x4x72xbf16>
    %1 = vector.shape_cast %0 : vector<1x1x4x72xbf16> to vector<4x72xbf16>
    %c0_3 = arith.constant 0 : index
    %c0_4 = arith.constant 0 : index
    %c0_5 = arith.constant 0 : index
    %2 = vector.load %arg2[%c0_3, %c0_4, %c0_5] : memref<9x8x4xbf16, #tpu.memory_space<vmem>>, vector<1x8x4xbf16>
    %3 = vector.shape_cast %2 : vector<1x8x4xbf16> to vector<8x4xbf16>
    %cst = arith.constant dense<0.000000e+00> : vector<8x72xf32>
    %4 = tpu.matmul %3, %1, %cst {dimension_numbers = #tpu.dot_dimension_numbers<[1], [0], [0], [1], [0, 0, 1, 1], [], []>} : vector<8x4xbf16>, vector<4x72xbf16>, vector<8x72xf32> -> vector<8x72xf32>
    %c0_6 = arith.constant 0 : index
    %c1 = arith.constant 1 : index
    %c0_7 = arith.constant 0 : index
    %c0_8 = arith.constant 0 : index
    %5 = vector.load %arg1[%c0_6, %c1, %c0_7, %c0_8] : memref<1x4x4x128xbf16, #tpu.memory_space<vmem>>, vector<1x1x4x72xbf16>
    %6 = vector.shape_cast %5 : vector<1x1x4x72xbf16> to vector<4x72xbf16>
    %c1_9 = arith.constant 1 : index
    %c0_10 = arith.constant 0 : index
    %c0_11 = arith.constant 0 : index
    %7 = vector.load %arg2[%c1_9, %c0_10, %c0_11] : memref<9x8x4xbf16, #tpu.memory_space<vmem>>, vector<1x8x4xbf16>
    %8 = vector.shape_cast %7 : vector<1x8x4xbf16> to vector<8x4xbf16>
    %cst_12 = arith.constant dense<0.000000e+00> : vector<8x72xf32>
    %9 = tpu.matmul %8, %6, %cst_12 {dimension_numbers = #tpu.dot_dimension_numbers<[1], [0], [0], [1], [0, 0, 1, 1], [], []>} : vector<8x4xbf16>, vector<4x72xbf16>, vector<8x72xf32> -> vector<8x72xf32>
    %10 = arith.addf %4, %9 : vector<8x72xf32>
    %c0_13 = arith.constant 0 : index
    %c0_14 = arith.constant 0 : index
    %c0_15 = arith.constant 0 : index
    %c1_16 = arith.constant 1 : index
    %11 = vector.load %arg1[%c0_13, %c0_14, %c0_15, %c1_16] : memref<1x4x4x128xbf16, #tpu.memory_space<vmem>>, vector<1x1x4x72xbf16>
    %12 = vector.shape_cast %11 : vector<1x1x4x72xbf16> to vector<4x72xbf16>
    %c2 = arith.constant 2 : index
    %c0_17 = arith.constant 0 : index
    %c0_18 = arith.constant 0 : index
    %13 = vector.load %arg2[%c2, %c0_17, %c0_18] : memref<9x8x4xbf16, #tpu.memory_space<vmem>>, vector<1x8x4xbf16>
    %14 = vector.shape_cast %13 : vector<1x8x4xbf16> to vector<8x4xbf16>
    %cst_19 = arith.constant dense<0.000000e+00> : vector<8x72xf32>
    %15 = tpu.matmul %14, %12, %cst_19 {dimension_numbers = #tpu.dot_dimension_numbers<[1], [0], [0], [1], [0, 0, 1, 1], [], []>} : vector<8x4xbf16>, vector<4x72xbf16>, vector<8x72xf32> -> vector<8x72xf32>
    %16 = arith.addf %10, %15 : vector<8x72xf32>
    %c0_20 = arith.constant 0 : index
    %c2_21 = arith.constant 2 : index
    %c0_22 = arith.constant 0 : index
    %c0_23 = arith.constant 0 : index
    %17 = vector.load %arg1[%c0_20, %c2_21, %c0_22, %c0_23] : memref<1x4x4x128xbf16, #tpu.memory_space<vmem>>, vector<1x1x4x72xbf16>
    %18 = vector.shape_cast %17 : vector<1x1x4x72xbf16> to vector<4x72xbf16>
    %c3 = arith.constant 3 : index
    %c0_24 = arith.constant 0 : index
    %c0_25 = arith.constant 0 : index
    %19 = vector.load %arg2[%c3, %c0_24, %c0_25] : memref<9x8x4xbf16, #tpu.memory_space<vmem>>, vector<1x8x4xbf16>
    %20 = vector.shape_cast %19 : vector<1x8x4xbf16> to vector<8x4xbf16>
    %cst_26 = arith.constant dense<0.000000e+00> : vector<8x72xf32>
    %21 = tpu.matmul %20, %18, %cst_26 {dimension_numbers = #tpu.dot_dimension_numbers<[1], [0], [0], [1], [0, 0, 1, 1], [], []>} : vector<8x4xbf16>, vector<4x72xbf16>, vector<8x72xf32> -> vector<8x72xf32>
    %22 = arith.addf %16, %21 : vector<8x72xf32>
    %c0_27 = arith.constant 0 : index
    %c3_28 = arith.constant 3 : index
    %c0_29 = arith.constant 0 : index
    %c0_30 = arith.constant 0 : index
    %23 = vector.load %arg1[%c0_27, %c3_28, %c0_29, %c0_30] : memref<1x4x4x128xbf16, #tpu.memory_space<vmem>>, vector<1x1x4x72xbf16>
    %24 = vector.shape_cast %23 : vector<1x1x4x72xbf16> to vector<4x72xbf16>
    %c4 = arith.constant 4 : index
    %c0_31 = arith.constant 0 : index
    %c0_32 = arith.constant 0 : index
    %25 = vector.load %arg2[%c4, %c0_31, %c0_32] : memref<9x8x4xbf16, #tpu.memory_space<vmem>>, vector<1x8x4xbf16>
    %26 = vector.shape_cast %25 : vector<1x8x4xbf16> to vector<8x4xbf16>
    %cst_33 = arith.constant dense<0.000000e+00> : vector<8x72xf32>
    %27 = tpu.matmul %26, %24, %cst_33 {dimension_numbers = #tpu.dot_dimension_numbers<[1], [0], [0], [1], [0, 0, 1, 1], [], []>} : vector<8x4xbf16>, vector<4x72xbf16>, vector<8x72xf32> -> vector<8x72xf32>
    %28 = arith.addf %22, %27 : vector<8x72xf32>
    %c0_34 = arith.constant 0 : index
    %c2_35 = arith.constant 2 : index
    %c0_36 = arith.constant 0 : index
    %c1_37 = arith.constant 1 : index
    %29 = vector.load %arg1[%c0_34, %c2_35, %c0_36, %c1_37] : memref<1x4x4x128xbf16, #tpu.memory_space<vmem>>, vector<1x1x4x72xbf16>
    %30 = vector.shape_cast %29 : vector<1x1x4x72xbf16> to vector<4x72xbf16>
    %c5 = arith.constant 5 : index
    %c0_38 = arith.constant 0 : index
    %c0_39 = arith.constant 0 : index
    %31 = vector.load %arg2[%c5, %c0_38, %c0_39] : memref<9x8x4xbf16, #tpu.memory_space<vmem>>, vector<1x8x4xbf16>
    %32 = vector.shape_cast %31 : vector<1x8x4xbf16> to vector<8x4xbf16>
    %cst_40 = arith.constant dense<0.000000e+00> : vector<8x72xf32>
    %33 = tpu.matmul %32, %30, %cst_40 {dimension_numbers = #tpu.dot_dimension_numbers<[1], [0], [0], [1], [0, 0, 1, 1], [], []>} : vector<8x4xbf16>, vector<4x72xbf16>, vector<8x72xf32> -> vector<8x72xf32>
    %34 = arith.addf %28, %33 : vector<8x72xf32>
    %c0_41 = arith.constant 0 : index
    %c0_42 = arith.constant 0 : index
    %c0_43 = arith.constant 0 : index
    %c9 = arith.constant 9 : index
    %35 = vector.load %arg1[%c0_41, %c0_42, %c0_43, %c9] : memref<1x4x4x128xbf16, #tpu.memory_space<vmem>>, vector<1x1x4x72xbf16>
    %36 = vector.shape_cast %35 : vector<1x1x4x72xbf16> to vector<4x72xbf16>
    %c6 = arith.constant 6 : index
    %c0_44 = arith.constant 0 : index
    %c0_45 = arith.constant 0 : index
    %37 = vector.load %arg2[%c6, %c0_44, %c0_45] : memref<9x8x4xbf16, #tpu.memory_space<vmem>>, vector<1x8x4xbf16>
    %38 = vector.shape_cast %37 : vector<1x8x4xbf16> to vector<8x4xbf16>
    %cst_46 = arith.constant dense<0.000000e+00> : vector<8x72xf32>
    %39 = tpu.matmul %38, %36, %cst_46 {dimension_numbers = #tpu.dot_dimension_numbers<[1], [0], [0], [1], [0, 0, 1, 1], [], []>} : vector<8x4xbf16>, vector<4x72xbf16>, vector<8x72xf32> -> vector<8x72xf32>
    %40 = arith.addf %34, %39 : vector<8x72xf32>
    %c0_47 = arith.constant 0 : index
    %c1_48 = arith.constant 1 : index
    %c0_49 = arith.constant 0 : index
    %c9_50 = arith.constant 9 : index
    %41 = vector.load %arg1[%c0_47, %c1_48, %c0_49, %c9_50] : memref<1x4x4x128xbf16, #tpu.memory_space<vmem>>, vector<1x1x4x72xbf16>
    %42 = vector.shape_cast %41 : vector<1x1x4x72xbf16> to vector<4x72xbf16>
    %c7 = arith.constant 7 : index
    %c0_51 = arith.constant 0 : index
    %c0_52 = arith.constant 0 : index
    %43 = vector.load %arg2[%c7, %c0_51, %c0_52] : memref<9x8x4xbf16, #tpu.memory_space<vmem>>, vector<1x8x4xbf16>
    %44 = vector.shape_cast %43 : vector<1x8x4xbf16> to vector<8x4xbf16>
    %cst_53 = arith.constant dense<0.000000e+00> : vector<8x72xf32>
    %45 = tpu.matmul %44, %42, %cst_53 {dimension_numbers = #tpu.dot_dimension_numbers<[1], [0], [0], [1], [0, 0, 1, 1], [], []>} : vector<8x4xbf16>, vector<4x72xbf16>, vector<8x72xf32> -> vector<8x72xf32>
    %46 = arith.addf %40, %45 : vector<8x72xf32>
    %c0_54 = arith.constant 0 : index
    %c0_55 = arith.constant 0 : index
    %c0_56 = arith.constant 0 : index
    %c10 = arith.constant 10 : index
    %47 = vector.load %arg1[%c0_54, %c0_55, %c0_56, %c10] : memref<1x4x4x128xbf16, #tpu.memory_space<vmem>>, vector<1x1x4x72xbf16>
    %48 = vector.shape_cast %47 : vector<1x1x4x72xbf16> to vector<4x72xbf16>
    %c8 = arith.constant 8 : index
    %c0_57 = arith.constant 0 : index
    %c0_58 = arith.constant 0 : index
    %49 = vector.load %arg2[%c8, %c0_57, %c0_58] : memref<9x8x4xbf16, #tpu.memory_space<vmem>>, vector<1x8x4xbf16>
    %50 = vector.shape_cast %49 : vector<1x8x4xbf16> to vector<8x4xbf16>
    %cst_59 = arith.constant dense<0.000000e+00> : vector<8x72xf32>
    %51 = tpu.matmul %50, %48, %cst_59 {dimension_numbers = #tpu.dot_dimension_numbers<[1], [0], [0], [1], [0, 0, 1, 1], [], []>} : vector<8x4xbf16>, vector<4x72xbf16>, vector<8x72xf32> -> vector<8x72xf32>
    %52 = arith.addf %46, %51 : vector<8x72xf32>
    %c0_60 = arith.constant 0 : index
    %c0_61 = arith.constant 0 : index
    %53 = vector.load %arg3[%c0_60, %c0_61] : memref<8x1xf32, #tpu.memory_space<vmem>>, vector<8x1xf32>
    %54 = vector.broadcast %53 : vector<8x1xf32> to vector<8x72xf32>
    %55 = arith.addf %52, %54 : vector<8x72xf32>
    %cst_62 = arith.constant 0.000000e+00 : f32
    %56 = vector.broadcast %cst_62 : f32 to vector<8x1xf32>
    %cst_63 = arith.constant 0.000000e+00 : f32
    %57 = vector.broadcast %cst_63 : f32 to vector<8x1xf32>
    %58 = vector.extract_strided_slice %55 {offsets = [0, 0], sizes = [8, 8], strides = [1, 1]} : vector<8x72xf32> to vector<8x8xf32>
    %c0_64 = arith.constant 0 : index
    %c0_65 = arith.constant 0 : index
    %c0_66 = arith.constant 0 : index
    %59 = vector.load %arg4[%c0_64, %c0_65, %c0_66] : memref<1x8x64xf32, #tpu.memory_space<vmem>>, vector<1x8x8xf32>
    %60 = vector.shape_cast %59 : vector<1x8x8xf32> to vector<8x8xf32>
    %61 = vector.shape_cast %58 : vector<8x8xf32> to vector<1x8x8xf32>
    tpu.vector_store %arg4[%c0_64, %c0_65, %c0_66], %61 {strides = array<i32>} : memref<1x8x64xf32, #tpu.memory_space<vmem>>, vector<1x8x8xf32>,
    %cst_67 = arith.constant dense<0.000000e+00> : vector<8xf32>
    %62 = vector.multi_reduction <add>, %58, %cst_67 [1] : vector<8x8xf32> to vector<8xf32>
    %63 = vector.shape_cast %62 : vector<8xf32> to vector<8x1xf32>
    %64 = arith.addf %56, %63 : vector<8x1xf32>
    %65 = arith.mulf %58, %58 : vector<8x8xf32>
    %cst_68 = arith.constant dense<0.000000e+00> : vector<8xf32>
    %66 = vector.multi_reduction <add>, %65, %cst_68 [1] : vector<8x8xf32> to vector<8xf32>
    %67 = vector.shape_cast %66 : vector<8xf32> to vector<8x1xf32>
    %68 = arith.addf %57, %67 : vector<8x1xf32>
    %69 = vector.extract_strided_slice %55 {offsets = [0, 9], sizes = [8, 8], strides = [1, 1]} : vector<8x72xf32> to vector<8x8xf32>
    %c0_69 = arith.constant 0 : index
    %c0_70 = arith.constant 0 : index
    %c8_71 = arith.constant 8 : index
    %70 = vector.load %arg4[%c0_69, %c0_70, %c8_71] : memref<1x8x64xf32, #tpu.memory_space<vmem>>, vector<1x8x8xf32>
    %71 = vector.shape_cast %70 : vector<1x8x8xf32> to vector<8x8xf32>
    %72 = vector.shape_cast %69 : vector<8x8xf32> to vector<1x8x8xf32>
    tpu.vector_store %arg4[%c0_69, %c0_70, %c8_71], %72 {strides = array<i32>} : memref<1x8x64xf32, #tpu.memory_space<vmem>>, vector<1x8x8xf32>,
    %cst_72 = arith.constant dense<0.000000e+00> : vector<8xf32>
    %73 = vector.multi_reduction <add>, %69, %cst_72 [1] : vector<8x8xf32> to vector<8xf32>
    %74 = vector.shape_cast %73 : vector<8xf32> to vector<8x1xf32>
    %75 = arith.addf %64, %74 : vector<8x1xf32>
    %76 = arith.mulf %69, %69 : vector<8x8xf32>
    %cst_73 = arith.constant dense<0.000000e+00> : vector<8xf32>
    %77 = vector.multi_reduction <add>, %76, %cst_73 [1] : vector<8x8xf32> to vector<8xf32>
    %78 = vector.shape_cast %77 : vector<8xf32> to vector<8x1xf32>
    %79 = arith.addf %68, %78 : vector<8x1xf32>
    %80 = vector.extract_strided_slice %55 {offsets = [0, 18], sizes = [8, 8], strides = [1, 1]} : vector<8x72xf32> to vector<8x8xf32>
    %c0_74 = arith.constant 0 : index
    %c0_75 = arith.constant 0 : index
    %c16 = arith.constant 16 : index
    %81 = vector.load %arg4[%c0_74, %c0_75, %c16] : memref<1x8x64xf32, #tpu.memory_space<vmem>>, vector<1x8x8xf32>
    %82 = vector.shape_cast %81 : vector<1x8x8xf32> to vector<8x8xf32>
    %83 = vector.shape_cast %80 : vector<8x8xf32> to vector<1x8x8xf32>
    tpu.vector_store %arg4[%c0_74, %c0_75, %c16], %83 {strides = array<i32>} : memref<1x8x64xf32, #tpu.memory_space<vmem>>, vector<1x8x8xf32>,
    %cst_76 = arith.constant dense<0.000000e+00> : vector<8xf32>
    %84 = vector.multi_reduction <add>, %80, %cst_76 [1] : vector<8x8xf32> to vector<8xf32>
    %85 = vector.shape_cast %84 : vector<8xf32> to vector<8x1xf32>
    %86 = arith.addf %75, %85 : vector<8x1xf32>
    %87 = arith.mulf %80, %80 : vector<8x8xf32>
    %cst_77 = arith.constant dense<0.000000e+00> : vector<8xf32>
    %88 = vector.multi_reduction <add>, %87, %cst_77 [1] : vector<8x8xf32> to vector<8xf32>
    %89 = vector.shape_cast %88 : vector<8xf32> to vector<8x1xf32>
    %90 = arith.addf %79, %89 : vector<8x1xf32>
    %91 = vector.extract_strided_slice %55 {offsets = [0, 27], sizes = [8, 8], strides = [1, 1]} : vector<8x72xf32> to vector<8x8xf32>
    %c0_78 = arith.constant 0 : index
    %c0_79 = arith.constant 0 : index
    %c24 = arith.constant 24 : index
    %92 = vector.load %arg4[%c0_78, %c0_79, %c24] : memref<1x8x64xf32, #tpu.memory_space<vmem>>, vector<1x8x8xf32>
    %93 = vector.shape_cast %92 : vector<1x8x8xf32> to vector<8x8xf32>
    %94 = vector.shape_cast %91 : vector<8x8xf32> to vector<1x8x8xf32>
    tpu.vector_store %arg4[%c0_78, %c0_79, %c24], %94 {strides = array<i32>} : memref<1x8x64xf32, #tpu.memory_space<vmem>>, vector<1x8x8xf32>,
    %cst_80 = arith.constant dense<0.000000e+00> : vector<8xf32>
    %95 = vector.multi_reduction <add>, %91, %cst_80 [1] : vector<8x8xf32> to vector<8xf32>
    %96 = vector.shape_cast %95 : vector<8xf32> to vector<8x1xf32>
    %97 = arith.addf %86, %96 : vector<8x1xf32>
    %98 = arith.mulf %91, %91 : vector<8x8xf32>
    %cst_81 = arith.constant dense<0.000000e+00> : vector<8xf32>
    %99 = vector.multi_reduction <add>, %98, %cst_81 [1] : vector<8x8xf32> to vector<8xf32>
    %100 = vector.shape_cast %99 : vector<8xf32> to vector<8x1xf32>
    %101 = arith.addf %90, %100 : vector<8x1xf32>
    %102 = vector.extract_strided_slice %55 {offsets = [0, 36], sizes = [8, 8], strides = [1, 1]} : vector<8x72xf32> to vector<8x8xf32>
    %c0_82 = arith.constant 0 : index
    %c0_83 = arith.constant 0 : index
    %c32 = arith.constant 32 : index
    %103 = vector.load %arg4[%c0_82, %c0_83, %c32] : memref<1x8x64xf32, #tpu.memory_space<vmem>>, vector<1x8x8xf32>
    %104 = vector.shape_cast %103 : vector<1x8x8xf32> to vector<8x8xf32>
    %105 = vector.shape_cast %102 : vector<8x8xf32> to vector<1x8x8xf32>
    tpu.vector_store %arg4[%c0_82, %c0_83, %c32], %105 {strides = array<i32>} : memref<1x8x64xf32, #tpu.memory_space<vmem>>, vector<1x8x8xf32>,
    %cst_84 = arith.constant dense<0.000000e+00> : vector<8xf32>
    %106 = vector.multi_reduction <add>, %102, %cst_84 [1] : vector<8x8xf32> to vector<8xf32>
    %107 = vector.shape_cast %106 : vector<8xf32> to vector<8x1xf32>
    %108 = arith.addf %97, %107 : vector<8x1xf32>
    %109 = arith.mulf %102, %102 : vector<8x8xf32>
    %cst_85 = arith.constant dense<0.000000e+00> : vector<8xf32>
    %110 = vector.multi_reduction <add>, %109, %cst_85 [1] : vector<8x8xf32> to vector<8xf32>
    %111 = vector.shape_cast %110 : vector<8xf32> to vector<8x1xf32>
    %112 = arith.addf %101, %111 : vector<8x1xf32>
    %113 = vector.extract_strided_slice %55 {offsets = [0, 45], sizes = [8, 8], strides = [1, 1]} : vector<8x72xf32> to vector<8x8xf32>
    %c0_86 = arith.constant 0 : index
    %c0_87 = arith.constant 0 : index
    %c40 = arith.constant 40 : index
    %114 = vector.load %arg4[%c0_86, %c0_87, %c40] : memref<1x8x64xf32, #tpu.memory_space<vmem>>, vector<1x8x8xf32>
    %115 = vector.shape_cast %114 : vector<1x8x8xf32> to vector<8x8xf32>
    %116 = vector.shape_cast %113 : vector<8x8xf32> to vector<1x8x8xf32>
    tpu.vector_store %arg4[%c0_86, %c0_87, %c40], %116 {strides = array<i32>} : memref<1x8x64xf32, #tpu.memory_space<vmem>>, vector<1x8x8xf32>,
    %cst_88 = arith.constant dense<0.000000e+00> : vector<8xf32>
    %117 = vector.multi_reduction <add>, %113, %cst_88 [1] : vector<8x8xf32> to vector<8xf32>
    %118 = vector.shape_cast %117 : vector<8xf32> to vector<8x1xf32>
    %119 = arith.addf %108, %118 : vector<8x1xf32>
    %120 = arith.mulf %113, %113 : vector<8x8xf32>
    %cst_89 = arith.constant dense<0.000000e+00> : vector<8xf32>
    %121 = vector.multi_reduction <add>, %120, %cst_89 [1] : vector<8x8xf32> to vector<8xf32>
    %122 = vector.shape_cast %121 : vector<8xf32> to vector<8x1xf32>
    %123 = arith.addf %112, %122 : vector<8x1xf32>
    %124 = vector.extract_strided_slice %55 {offsets = [0, 54], sizes = [8, 8], strides = [1, 1]} : vector<8x72xf32> to vector<8x8xf32>
    %c0_90 = arith.constant 0 : index
    %c0_91 = arith.constant 0 : index
    %c48 = arith.constant 48 : index
    %125 = vector.load %arg4[%c0_90, %c0_91, %c48] : memref<1x8x64xf32, #tpu.memory_space<vmem>>, vector<1x8x8xf32>
    %126 = vector.shape_cast %125 : vector<1x8x8xf32> to vector<8x8xf32>
    %127 = vector.shape_cast %124 : vector<8x8xf32> to vector<1x8x8xf32>
    tpu.vector_store %arg4[%c0_90, %c0_91, %c48], %127 {strides = array<i32>} : memref<1x8x64xf32, #tpu.memory_space<vmem>>, vector<1x8x8xf32>,
    %cst_92 = arith.constant dense<0.000000e+00> : vector<8xf32>
    %128 = vector.multi_reduction <add>, %124, %cst_92 [1] : vector<8x8xf32> to vector<8xf32>
    %129 = vector.shape_cast %128 : vector<8xf32> to vector<8x1xf32>
    %130 = arith.addf %119, %129 : vector<8x1xf32>
    %131 = arith.mulf %124, %124 : vector<8x8xf32>
    %cst_93 = arith.constant dense<0.000000e+00> : vector<8xf32>
    %132 = vector.multi_reduction <add>, %131, %cst_93 [1] : vector<8x8xf32> to vector<8xf32>
    %133 = vector.shape_cast %132 : vector<8xf32> to vector<8x1xf32>
    %134 = arith.addf %123, %133 : vector<8x1xf32>
    %135 = vector.extract_strided_slice %55 {offsets = [0, 63], sizes = [8, 8], strides = [1, 1]} : vector<8x72xf32> to vector<8x8xf32>
    %c0_94 = arith.constant 0 : index
    %c0_95 = arith.constant 0 : index
    %c56 = arith.constant 56 : index
    %136 = vector.load %arg4[%c0_94, %c0_95, %c56] : memref<1x8x64xf32, #tpu.memory_space<vmem>>, vector<1x8x8xf32>
    %137 = vector.shape_cast %136 : vector<1x8x8xf32> to vector<8x8xf32>
    %138 = vector.shape_cast %135 : vector<8x8xf32> to vector<1x8x8xf32>
    tpu.vector_store %arg4[%c0_94, %c0_95, %c56], %138 {strides = array<i32>} : memref<1x8x64xf32, #tpu.memory_space<vmem>>, vector<1x8x8xf32>,
    %cst_96 = arith.constant dense<0.000000e+00> : vector<8xf32>
    %139 = vector.multi_reduction <add>, %135, %cst_96 [1] : vector<8x8xf32> to vector<8xf32>
    %140 = vector.shape_cast %139 : vector<8xf32> to vector<8x1xf32>
    %141 = arith.addf %130, %140 : vector<8x1xf32>
    %142 = arith.mulf %135, %135 : vector<8x8xf32>
    %cst_97 = arith.constant dense<0.000000e+00> : vector<8xf32>
    %143 = vector.multi_reduction <add>, %142, %cst_97 [1] : vector<8x8xf32> to vector<8xf32>
    %144 = vector.shape_cast %143 : vector<8xf32> to vector<8x1xf32>
    %145 = arith.addf %134, %144 : vector<8x1xf32>
    %c0_98 = arith.constant 0 : index
    %c0_99 = arith.constant 0 : index
    %c0_100 = arith.constant 0 : index
    %146 = vector.load %arg5[%c0_98, %c0_99, %c0_100] : memref<1x8x2xf32, #tpu.memory_space<vmem>>, vector<1x8x1xf32>
    %147 = vector.shape_cast %146 : vector<1x8x1xf32> to vector<8x1xf32>
    %148 = vector.shape_cast %141 : vector<8x1xf32> to vector<1x8x1xf32>
    tpu.vector_store %arg5[%c0_98, %c0_99, %c0_100], %148 {strides = array<i32>} : memref<1x8x2xf32, #tpu.memory_space<vmem>>, vector<1x8x1xf32>,
    %c0_101 = arith.constant 0 : index
    %c0_102 = arith.constant 0 : index
    %c1_103 = arith.constant 1 : index
    %149 = vector.load %arg5[%c0_101, %c0_102, %c1_103] : memref<1x8x2xf32, #tpu.memory_space<vmem>>, vector<1x8x1xf32>
    %150 = vector.shape_cast %149 : vector<1x8x1xf32> to vector<8x1xf32>
    %151 = vector.shape_cast %145 : vector<8x1xf32> to vector<1x8x1xf32>
    tpu.vector_store %arg5[%c0_101, %c0_102, %c1_103], %151 {strides = array<i32>} : memref<1x8x2xf32, #tpu.memory_space<vmem>>, vector<1x8x1xf32>,
    return
  }
  func.func @transform_0(%arg0: i32) -> (i32, i32, i32, i32) {
    %c0_i32 = arith.constant 0 : i32
    %c0_i32_0 = arith.constant 0 : i32
    %c0_i32_1 = arith.constant 0 : i32
    %c0_i32_2 = arith.constant 0 : i32
    return %arg0, %c0_i32, %c0_i32_0, %c0_i32_1 : i32, i32, i32, i32
  }
  func.func @transform_1(%arg0: i32) -> (i32, i32, i32) {
    %c0_i32 = arith.constant 0 : i32
    %c0_i32_0 = arith.constant 0 : i32
    %c0_i32_1 = arith.constant 0 : i32
    %c0_i32_2 = arith.constant 0 : i32
    return %c0_i32, %c0_i32_0, %c0_i32_1 : i32, i32, i32
  }
  func.func @transform_2(%arg0: i32) -> (i32, i32) {
    %c0_i32 = arith.constant 0 : i32
    %c0_i32_0 = arith.constant 0 : i32
    %c0_i32_1 = arith.constant 0 : i32
    return %c0_i32, %c0_i32_0 : i32, i32
  }
  func.func @transform_3(%arg0: i32) -> (i32, i32, i32) {
    %c0_i32 = arith.constant 0 : i32
    %c0_i32_0 = arith.constant 0 : i32
    %c0_i32_1 = arith.constant 0 : i32
    return %arg0, %c0_i32, %c0_i32_0 : i32, i32, i32
  }
  func.func @transform_4(%arg0: i32) -> (i32, i32, i32) {
    %c0_i32 = arith.constant 0 : i32
    %c0_i32_0 = arith.constant 0 : i32
    %c0_i32_1 = arith.constant 0 : i32
    return %arg0, %c0_i32, %c0_i32_0 : i32, i32, i32
  }
}

module attributes {stable_mosaic.version = 11 : i64} {
  func.func @_conv_kernel(%arg0: i32, %arg1: memref<1x1x8x128xbf16, #tpu.memory_space<vmem>>, %arg2: memref<9x8x8xbf16, #tpu.memory_space<vmem>>, %arg3: memref<8x1xf32, #tpu.memory_space<vmem>>, %arg4: memref<1x8x64xf32, #tpu.memory_space<vmem>>, %arg5: memref<1x8x2xf32, #tpu.memory_space<vmem>>) attributes {dimension_semantics = [#tpu.dimension_semantics<parallel>], iteration_bounds = array<i64: 2>, scalar_prefetch = 0 : i64, scratch_operands = 0 : i64, tpu.core_type = #tpu.core_type<tc>, window_params = [{transform_indices = @transform_0, window_bounds = array<i64: 1, 1, 8, 128>}, {pipeline_mode = #tpu.pipeline_mode<synchronous>, transform_indices = @transform_1, window_bounds = array<i64: 9, 8, 8>}, {pipeline_mode = #tpu.pipeline_mode<synchronous>, transform_indices = @transform_2, window_bounds = array<i64: 8, 1>}, {transform_indices = @transform_3, window_bounds = array<i64: 1, 8, 64>}, {transform_indices = @transform_4, window_bounds = array<i64: 1, 8, 2>}]} {
    %c0 = arith.constant 0 : index
    %c0_0 = arith.constant 0 : index
    %c0_1 = arith.constant 0 : index
    %c0_2 = arith.constant 0 : index
    %0 = vector.load %arg1[%c0, %c0_0, %c0_1, %c0_2] : memref<1x1x8x128xbf16, #tpu.memory_space<vmem>>, vector<1x1x8x80xbf16>
    %1 = vector.shape_cast %0 : vector<1x1x8x80xbf16> to vector<8x80xbf16>
    %c0_3 = arith.constant 0 : index
    %c0_4 = arith.constant 0 : index
    %c0_5 = arith.constant 0 : index
    %2 = vector.load %arg2[%c0_3, %c0_4, %c0_5] : memref<9x8x8xbf16, #tpu.memory_space<vmem>>, vector<1x8x8xbf16>
    %3 = vector.shape_cast %2 : vector<1x8x8xbf16> to vector<8x8xbf16>
    %cst = arith.constant dense<0.000000e+00> : vector<8x80xf32>
    %4 = tpu.matmul %3, %1, %cst {dimension_numbers = #tpu.dot_dimension_numbers<[1], [0], [0], [1], [0, 0, 1, 1], [], []>} : vector<8x8xbf16>, vector<8x80xbf16>, vector<8x80xf32> -> vector<8x80xf32>
    %c0_6 = arith.constant 0 : index
    %c0_7 = arith.constant 0 : index
    %c0_8 = arith.constant 0 : index
    %c1 = arith.constant 1 : index
    %5 = vector.load %arg1[%c0_6, %c0_7, %c0_8, %c1] : memref<1x1x8x128xbf16, #tpu.memory_space<vmem>>, vector<1x1x8x80xbf16>
    %6 = vector.shape_cast %5 : vector<1x1x8x80xbf16> to vector<8x80xbf16>
    %c1_9 = arith.constant 1 : index
    %c0_10 = arith.constant 0 : index
    %c0_11 = arith.constant 0 : index
    %7 = vector.load %arg2[%c1_9, %c0_10, %c0_11] : memref<9x8x8xbf16, #tpu.memory_space<vmem>>, vector<1x8x8xbf16>
    %8 = vector.shape_cast %7 : vector<1x8x8xbf16> to vector<8x8xbf16>
    %cst_12 = arith.constant dense<0.000000e+00> : vector<8x80xf32>
    %9 = tpu.matmul %8, %6, %cst_12 {dimension_numbers = #tpu.dot_dimension_numbers<[1], [0], [0], [1], [0, 0, 1, 1], [], []>} : vector<8x8xbf16>, vector<8x80xbf16>, vector<8x80xf32> -> vector<8x80xf32>
    %10 = arith.addf %4, %9 : vector<8x80xf32>
    %c0_13 = arith.constant 0 : index
    %c0_14 = arith.constant 0 : index
    %c0_15 = arith.constant 0 : index
    %c2 = arith.constant 2 : index
    %11 = vector.load %arg1[%c0_13, %c0_14, %c0_15, %c2] : memref<1x1x8x128xbf16, #tpu.memory_space<vmem>>, vector<1x1x8x80xbf16>
    %12 = vector.shape_cast %11 : vector<1x1x8x80xbf16> to vector<8x80xbf16>
    %c2_16 = arith.constant 2 : index
    %c0_17 = arith.constant 0 : index
    %c0_18 = arith.constant 0 : index
    %13 = vector.load %arg2[%c2_16, %c0_17, %c0_18] : memref<9x8x8xbf16, #tpu.memory_space<vmem>>, vector<1x8x8xbf16>
    %14 = vector.shape_cast %13 : vector<1x8x8xbf16> to vector<8x8xbf16>
    %cst_19 = arith.constant dense<0.000000e+00> : vector<8x80xf32>
    %15 = tpu.matmul %14, %12, %cst_19 {dimension_numbers = #tpu.dot_dimension_numbers<[1], [0], [0], [1], [0, 0, 1, 1], [], []>} : vector<8x8xbf16>, vector<8x80xbf16>, vector<8x80xf32> -> vector<8x80xf32>
    %16 = arith.addf %10, %15 : vector<8x80xf32>
    %c0_20 = arith.constant 0 : index
    %c0_21 = arith.constant 0 : index
    %c0_22 = arith.constant 0 : index
    %c10 = arith.constant 10 : index
    %17 = vector.load %arg1[%c0_20, %c0_21, %c0_22, %c10] : memref<1x1x8x128xbf16, #tpu.memory_space<vmem>>, vector<1x1x8x80xbf16>
    %18 = vector.shape_cast %17 : vector<1x1x8x80xbf16> to vector<8x80xbf16>
    %c3 = arith.constant 3 : index
    %c0_23 = arith.constant 0 : index
    %c0_24 = arith.constant 0 : index
    %19 = vector.load %arg2[%c3, %c0_23, %c0_24] : memref<9x8x8xbf16, #tpu.memory_space<vmem>>, vector<1x8x8xbf16>
    %20 = vector.shape_cast %19 : vector<1x8x8xbf16> to vector<8x8xbf16>
    %cst_25 = arith.constant dense<0.000000e+00> : vector<8x80xf32>
    %21 = tpu.matmul %20, %18, %cst_25 {dimension_numbers = #tpu.dot_dimension_numbers<[1], [0], [0], [1], [0, 0, 1, 1], [], []>} : vector<8x8xbf16>, vector<8x80xbf16>, vector<8x80xf32> -> vector<8x80xf32>
    %22 = arith.addf %16, %21 : vector<8x80xf32>
    %c0_26 = arith.constant 0 : index
    %c0_27 = arith.constant 0 : index
    %c0_28 = arith.constant 0 : index
    %c11 = arith.constant 11 : index
    %23 = vector.load %arg1[%c0_26, %c0_27, %c0_28, %c11] : memref<1x1x8x128xbf16, #tpu.memory_space<vmem>>, vector<1x1x8x80xbf16>
    %24 = vector.shape_cast %23 : vector<1x1x8x80xbf16> to vector<8x80xbf16>
    %c4 = arith.constant 4 : index
    %c0_29 = arith.constant 0 : index
    %c0_30 = arith.constant 0 : index
    %25 = vector.load %arg2[%c4, %c0_29, %c0_30] : memref<9x8x8xbf16, #tpu.memory_space<vmem>>, vector<1x8x8xbf16>
    %26 = vector.shape_cast %25 : vector<1x8x8xbf16> to vector<8x8xbf16>
    %cst_31 = arith.constant dense<0.000000e+00> : vector<8x80xf32>
    %27 = tpu.matmul %26, %24, %cst_31 {dimension_numbers = #tpu.dot_dimension_numbers<[1], [0], [0], [1], [0, 0, 1, 1], [], []>} : vector<8x8xbf16>, vector<8x80xbf16>, vector<8x80xf32> -> vector<8x80xf32>
    %28 = arith.addf %22, %27 : vector<8x80xf32>
    %c0_32 = arith.constant 0 : index
    %c0_33 = arith.constant 0 : index
    %c0_34 = arith.constant 0 : index
    %c12 = arith.constant 12 : index
    %29 = vector.load %arg1[%c0_32, %c0_33, %c0_34, %c12] : memref<1x1x8x128xbf16, #tpu.memory_space<vmem>>, vector<1x1x8x80xbf16>
    %30 = vector.shape_cast %29 : vector<1x1x8x80xbf16> to vector<8x80xbf16>
    %c5 = arith.constant 5 : index
    %c0_35 = arith.constant 0 : index
    %c0_36 = arith.constant 0 : index
    %31 = vector.load %arg2[%c5, %c0_35, %c0_36] : memref<9x8x8xbf16, #tpu.memory_space<vmem>>, vector<1x8x8xbf16>
    %32 = vector.shape_cast %31 : vector<1x8x8xbf16> to vector<8x8xbf16>
    %cst_37 = arith.constant dense<0.000000e+00> : vector<8x80xf32>
    %33 = tpu.matmul %32, %30, %cst_37 {dimension_numbers = #tpu.dot_dimension_numbers<[1], [0], [0], [1], [0, 0, 1, 1], [], []>} : vector<8x8xbf16>, vector<8x80xbf16>, vector<8x80xf32> -> vector<8x80xf32>
    %34 = arith.addf %28, %33 : vector<8x80xf32>
    %c0_38 = arith.constant 0 : index
    %c0_39 = arith.constant 0 : index
    %c0_40 = arith.constant 0 : index
    %c20 = arith.constant 20 : index
    %35 = vector.load %arg1[%c0_38, %c0_39, %c0_40, %c20] : memref<1x1x8x128xbf16, #tpu.memory_space<vmem>>, vector<1x1x8x80xbf16>
    %36 = vector.shape_cast %35 : vector<1x1x8x80xbf16> to vector<8x80xbf16>
    %c6 = arith.constant 6 : index
    %c0_41 = arith.constant 0 : index
    %c0_42 = arith.constant 0 : index
    %37 = vector.load %arg2[%c6, %c0_41, %c0_42] : memref<9x8x8xbf16, #tpu.memory_space<vmem>>, vector<1x8x8xbf16>
    %38 = vector.shape_cast %37 : vector<1x8x8xbf16> to vector<8x8xbf16>
    %cst_43 = arith.constant dense<0.000000e+00> : vector<8x80xf32>
    %39 = tpu.matmul %38, %36, %cst_43 {dimension_numbers = #tpu.dot_dimension_numbers<[1], [0], [0], [1], [0, 0, 1, 1], [], []>} : vector<8x8xbf16>, vector<8x80xbf16>, vector<8x80xf32> -> vector<8x80xf32>
    %40 = arith.addf %34, %39 : vector<8x80xf32>
    %c0_44 = arith.constant 0 : index
    %c0_45 = arith.constant 0 : index
    %c0_46 = arith.constant 0 : index
    %c21 = arith.constant 21 : index
    %41 = vector.load %arg1[%c0_44, %c0_45, %c0_46, %c21] : memref<1x1x8x128xbf16, #tpu.memory_space<vmem>>, vector<1x1x8x80xbf16>
    %42 = vector.shape_cast %41 : vector<1x1x8x80xbf16> to vector<8x80xbf16>
    %c7 = arith.constant 7 : index
    %c0_47 = arith.constant 0 : index
    %c0_48 = arith.constant 0 : index
    %43 = vector.load %arg2[%c7, %c0_47, %c0_48] : memref<9x8x8xbf16, #tpu.memory_space<vmem>>, vector<1x8x8xbf16>
    %44 = vector.shape_cast %43 : vector<1x8x8xbf16> to vector<8x8xbf16>
    %cst_49 = arith.constant dense<0.000000e+00> : vector<8x80xf32>
    %45 = tpu.matmul %44, %42, %cst_49 {dimension_numbers = #tpu.dot_dimension_numbers<[1], [0], [0], [1], [0, 0, 1, 1], [], []>} : vector<8x8xbf16>, vector<8x80xbf16>, vector<8x80xf32> -> vector<8x80xf32>
    %46 = arith.addf %40, %45 : vector<8x80xf32>
    %c0_50 = arith.constant 0 : index
    %c0_51 = arith.constant 0 : index
    %c0_52 = arith.constant 0 : index
    %c22 = arith.constant 22 : index
    %47 = vector.load %arg1[%c0_50, %c0_51, %c0_52, %c22] : memref<1x1x8x128xbf16, #tpu.memory_space<vmem>>, vector<1x1x8x80xbf16>
    %48 = vector.shape_cast %47 : vector<1x1x8x80xbf16> to vector<8x80xbf16>
    %c8 = arith.constant 8 : index
    %c0_53 = arith.constant 0 : index
    %c0_54 = arith.constant 0 : index
    %49 = vector.load %arg2[%c8, %c0_53, %c0_54] : memref<9x8x8xbf16, #tpu.memory_space<vmem>>, vector<1x8x8xbf16>
    %50 = vector.shape_cast %49 : vector<1x8x8xbf16> to vector<8x8xbf16>
    %cst_55 = arith.constant dense<0.000000e+00> : vector<8x80xf32>
    %51 = tpu.matmul %50, %48, %cst_55 {dimension_numbers = #tpu.dot_dimension_numbers<[1], [0], [0], [1], [0, 0, 1, 1], [], []>} : vector<8x8xbf16>, vector<8x80xbf16>, vector<8x80xf32> -> vector<8x80xf32>
    %52 = arith.addf %46, %51 : vector<8x80xf32>
    %c0_56 = arith.constant 0 : index
    %c0_57 = arith.constant 0 : index
    %53 = vector.load %arg3[%c0_56, %c0_57] : memref<8x1xf32, #tpu.memory_space<vmem>>, vector<8x1xf32>
    %54 = vector.broadcast %53 : vector<8x1xf32> to vector<8x80xf32>
    %55 = arith.addf %52, %54 : vector<8x80xf32>
    %cst_58 = arith.constant 0.000000e+00 : f32
    %56 = vector.broadcast %cst_58 : f32 to vector<8x1xf32>
    %cst_59 = arith.constant 0.000000e+00 : f32
    %57 = vector.broadcast %cst_59 : f32 to vector<8x1xf32>
    %58 = vector.extract_strided_slice %55 {offsets = [0, 0], sizes = [8, 8], strides = [1, 1]} : vector<8x80xf32> to vector<8x8xf32>
    %c0_60 = arith.constant 0 : index
    %c0_61 = arith.constant 0 : index
    %c0_62 = arith.constant 0 : index
    %59 = vector.load %arg4[%c0_60, %c0_61, %c0_62] : memref<1x8x64xf32, #tpu.memory_space<vmem>>, vector<1x8x8xf32>
    %60 = vector.shape_cast %59 : vector<1x8x8xf32> to vector<8x8xf32>
    %61 = vector.shape_cast %58 : vector<8x8xf32> to vector<1x8x8xf32>
    tpu.vector_store %arg4[%c0_60, %c0_61, %c0_62], %61 {strides = array<i32>} : memref<1x8x64xf32, #tpu.memory_space<vmem>>, vector<1x8x8xf32>,
    %cst_63 = arith.constant dense<0.000000e+00> : vector<8xf32>
    %62 = vector.multi_reduction <add>, %58, %cst_63 [1] : vector<8x8xf32> to vector<8xf32>
    %63 = vector.shape_cast %62 : vector<8xf32> to vector<8x1xf32>
    %64 = arith.addf %56, %63 : vector<8x1xf32>
    %65 = arith.mulf %58, %58 : vector<8x8xf32>
    %cst_64 = arith.constant dense<0.000000e+00> : vector<8xf32>
    %66 = vector.multi_reduction <add>, %65, %cst_64 [1] : vector<8x8xf32> to vector<8xf32>
    %67 = vector.shape_cast %66 : vector<8xf32> to vector<8x1xf32>
    %68 = arith.addf %57, %67 : vector<8x1xf32>
    %69 = vector.extract_strided_slice %55 {offsets = [0, 10], sizes = [8, 8], strides = [1, 1]} : vector<8x80xf32> to vector<8x8xf32>
    %c0_65 = arith.constant 0 : index
    %c0_66 = arith.constant 0 : index
    %c8_67 = arith.constant 8 : index
    %70 = vector.load %arg4[%c0_65, %c0_66, %c8_67] : memref<1x8x64xf32, #tpu.memory_space<vmem>>, vector<1x8x8xf32>
    %71 = vector.shape_cast %70 : vector<1x8x8xf32> to vector<8x8xf32>
    %72 = vector.shape_cast %69 : vector<8x8xf32> to vector<1x8x8xf32>
    tpu.vector_store %arg4[%c0_65, %c0_66, %c8_67], %72 {strides = array<i32>} : memref<1x8x64xf32, #tpu.memory_space<vmem>>, vector<1x8x8xf32>,
    %cst_68 = arith.constant dense<0.000000e+00> : vector<8xf32>
    %73 = vector.multi_reduction <add>, %69, %cst_68 [1] : vector<8x8xf32> to vector<8xf32>
    %74 = vector.shape_cast %73 : vector<8xf32> to vector<8x1xf32>
    %75 = arith.addf %64, %74 : vector<8x1xf32>
    %76 = arith.mulf %69, %69 : vector<8x8xf32>
    %cst_69 = arith.constant dense<0.000000e+00> : vector<8xf32>
    %77 = vector.multi_reduction <add>, %76, %cst_69 [1] : vector<8x8xf32> to vector<8xf32>
    %78 = vector.shape_cast %77 : vector<8xf32> to vector<8x1xf32>
    %79 = arith.addf %68, %78 : vector<8x1xf32>
    %80 = vector.extract_strided_slice %55 {offsets = [0, 20], sizes = [8, 8], strides = [1, 1]} : vector<8x80xf32> to vector<8x8xf32>
    %c0_70 = arith.constant 0 : index
    %c0_71 = arith.constant 0 : index
    %c16 = arith.constant 16 : index
    %81 = vector.load %arg4[%c0_70, %c0_71, %c16] : memref<1x8x64xf32, #tpu.memory_space<vmem>>, vector<1x8x8xf32>
    %82 = vector.shape_cast %81 : vector<1x8x8xf32> to vector<8x8xf32>
    %83 = vector.shape_cast %80 : vector<8x8xf32> to vector<1x8x8xf32>
    tpu.vector_store %arg4[%c0_70, %c0_71, %c16], %83 {strides = array<i32>} : memref<1x8x64xf32, #tpu.memory_space<vmem>>, vector<1x8x8xf32>,
    %cst_72 = arith.constant dense<0.000000e+00> : vector<8xf32>
    %84 = vector.multi_reduction <add>, %80, %cst_72 [1] : vector<8x8xf32> to vector<8xf32>
    %85 = vector.shape_cast %84 : vector<8xf32> to vector<8x1xf32>
    %86 = arith.addf %75, %85 : vector<8x1xf32>
    %87 = arith.mulf %80, %80 : vector<8x8xf32>
    %cst_73 = arith.constant dense<0.000000e+00> : vector<8xf32>
    %88 = vector.multi_reduction <add>, %87, %cst_73 [1] : vector<8x8xf32> to vector<8xf32>
    %89 = vector.shape_cast %88 : vector<8xf32> to vector<8x1xf32>
    %90 = arith.addf %79, %89 : vector<8x1xf32>
    %91 = vector.extract_strided_slice %55 {offsets = [0, 30], sizes = [8, 8], strides = [1, 1]} : vector<8x80xf32> to vector<8x8xf32>
    %c0_74 = arith.constant 0 : index
    %c0_75 = arith.constant 0 : index
    %c24 = arith.constant 24 : index
    %92 = vector.load %arg4[%c0_74, %c0_75, %c24] : memref<1x8x64xf32, #tpu.memory_space<vmem>>, vector<1x8x8xf32>
    %93 = vector.shape_cast %92 : vector<1x8x8xf32> to vector<8x8xf32>
    %94 = vector.shape_cast %91 : vector<8x8xf32> to vector<1x8x8xf32>
    tpu.vector_store %arg4[%c0_74, %c0_75, %c24], %94 {strides = array<i32>} : memref<1x8x64xf32, #tpu.memory_space<vmem>>, vector<1x8x8xf32>,
    %cst_76 = arith.constant dense<0.000000e+00> : vector<8xf32>
    %95 = vector.multi_reduction <add>, %91, %cst_76 [1] : vector<8x8xf32> to vector<8xf32>
    %96 = vector.shape_cast %95 : vector<8xf32> to vector<8x1xf32>
    %97 = arith.addf %86, %96 : vector<8x1xf32>
    %98 = arith.mulf %91, %91 : vector<8x8xf32>
    %cst_77 = arith.constant dense<0.000000e+00> : vector<8xf32>
    %99 = vector.multi_reduction <add>, %98, %cst_77 [1] : vector<8x8xf32> to vector<8xf32>
    %100 = vector.shape_cast %99 : vector<8xf32> to vector<8x1xf32>
    %101 = arith.addf %90, %100 : vector<8x1xf32>
    %102 = vector.extract_strided_slice %55 {offsets = [0, 40], sizes = [8, 8], strides = [1, 1]} : vector<8x80xf32> to vector<8x8xf32>
    %c0_78 = arith.constant 0 : index
    %c0_79 = arith.constant 0 : index
    %c32 = arith.constant 32 : index
    %103 = vector.load %arg4[%c0_78, %c0_79, %c32] : memref<1x8x64xf32, #tpu.memory_space<vmem>>, vector<1x8x8xf32>
    %104 = vector.shape_cast %103 : vector<1x8x8xf32> to vector<8x8xf32>
    %105 = vector.shape_cast %102 : vector<8x8xf32> to vector<1x8x8xf32>
    tpu.vector_store %arg4[%c0_78, %c0_79, %c32], %105 {strides = array<i32>} : memref<1x8x64xf32, #tpu.memory_space<vmem>>, vector<1x8x8xf32>,
    %cst_80 = arith.constant dense<0.000000e+00> : vector<8xf32>
    %106 = vector.multi_reduction <add>, %102, %cst_80 [1] : vector<8x8xf32> to vector<8xf32>
    %107 = vector.shape_cast %106 : vector<8xf32> to vector<8x1xf32>
    %108 = arith.addf %97, %107 : vector<8x1xf32>
    %109 = arith.mulf %102, %102 : vector<8x8xf32>
    %cst_81 = arith.constant dense<0.000000e+00> : vector<8xf32>
    %110 = vector.multi_reduction <add>, %109, %cst_81 [1] : vector<8x8xf32> to vector<8xf32>
    %111 = vector.shape_cast %110 : vector<8xf32> to vector<8x1xf32>
    %112 = arith.addf %101, %111 : vector<8x1xf32>
    %113 = vector.extract_strided_slice %55 {offsets = [0, 50], sizes = [8, 8], strides = [1, 1]} : vector<8x80xf32> to vector<8x8xf32>
    %c0_82 = arith.constant 0 : index
    %c0_83 = arith.constant 0 : index
    %c40 = arith.constant 40 : index
    %114 = vector.load %arg4[%c0_82, %c0_83, %c40] : memref<1x8x64xf32, #tpu.memory_space<vmem>>, vector<1x8x8xf32>
    %115 = vector.shape_cast %114 : vector<1x8x8xf32> to vector<8x8xf32>
    %116 = vector.shape_cast %113 : vector<8x8xf32> to vector<1x8x8xf32>
    tpu.vector_store %arg4[%c0_82, %c0_83, %c40], %116 {strides = array<i32>} : memref<1x8x64xf32, #tpu.memory_space<vmem>>, vector<1x8x8xf32>,
    %cst_84 = arith.constant dense<0.000000e+00> : vector<8xf32>
    %117 = vector.multi_reduction <add>, %113, %cst_84 [1] : vector<8x8xf32> to vector<8xf32>
    %118 = vector.shape_cast %117 : vector<8xf32> to vector<8x1xf32>
    %119 = arith.addf %108, %118 : vector<8x1xf32>
    %120 = arith.mulf %113, %113 : vector<8x8xf32>
    %cst_85 = arith.constant dense<0.000000e+00> : vector<8xf32>
    %121 = vector.multi_reduction <add>, %120, %cst_85 [1] : vector<8x8xf32> to vector<8xf32>
    %122 = vector.shape_cast %121 : vector<8xf32> to vector<8x1xf32>
    %123 = arith.addf %112, %122 : vector<8x1xf32>
    %124 = vector.extract_strided_slice %55 {offsets = [0, 60], sizes = [8, 8], strides = [1, 1]} : vector<8x80xf32> to vector<8x8xf32>
    %c0_86 = arith.constant 0 : index
    %c0_87 = arith.constant 0 : index
    %c48 = arith.constant 48 : index
    %125 = vector.load %arg4[%c0_86, %c0_87, %c48] : memref<1x8x64xf32, #tpu.memory_space<vmem>>, vector<1x8x8xf32>
    %126 = vector.shape_cast %125 : vector<1x8x8xf32> to vector<8x8xf32>
    %127 = vector.shape_cast %124 : vector<8x8xf32> to vector<1x8x8xf32>
    tpu.vector_store %arg4[%c0_86, %c0_87, %c48], %127 {strides = array<i32>} : memref<1x8x64xf32, #tpu.memory_space<vmem>>, vector<1x8x8xf32>,
    %cst_88 = arith.constant dense<0.000000e+00> : vector<8xf32>
    %128 = vector.multi_reduction <add>, %124, %cst_88 [1] : vector<8x8xf32> to vector<8xf32>
    %129 = vector.shape_cast %128 : vector<8xf32> to vector<8x1xf32>
    %130 = arith.addf %119, %129 : vector<8x1xf32>
    %131 = arith.mulf %124, %124 : vector<8x8xf32>
    %cst_89 = arith.constant dense<0.000000e+00> : vector<8xf32>
    %132 = vector.multi_reduction <add>, %131, %cst_89 [1] : vector<8x8xf32> to vector<8xf32>
    %133 = vector.shape_cast %132 : vector<8xf32> to vector<8x1xf32>
    %134 = arith.addf %123, %133 : vector<8x1xf32>
    %135 = vector.extract_strided_slice %55 {offsets = [0, 70], sizes = [8, 8], strides = [1, 1]} : vector<8x80xf32> to vector<8x8xf32>
    %c0_90 = arith.constant 0 : index
    %c0_91 = arith.constant 0 : index
    %c56 = arith.constant 56 : index
    %136 = vector.load %arg4[%c0_90, %c0_91, %c56] : memref<1x8x64xf32, #tpu.memory_space<vmem>>, vector<1x8x8xf32>
    %137 = vector.shape_cast %136 : vector<1x8x8xf32> to vector<8x8xf32>
    %138 = vector.shape_cast %135 : vector<8x8xf32> to vector<1x8x8xf32>
    tpu.vector_store %arg4[%c0_90, %c0_91, %c56], %138 {strides = array<i32>} : memref<1x8x64xf32, #tpu.memory_space<vmem>>, vector<1x8x8xf32>,
    %cst_92 = arith.constant dense<0.000000e+00> : vector<8xf32>
    %139 = vector.multi_reduction <add>, %135, %cst_92 [1] : vector<8x8xf32> to vector<8xf32>
    %140 = vector.shape_cast %139 : vector<8xf32> to vector<8x1xf32>
    %141 = arith.addf %130, %140 : vector<8x1xf32>
    %142 = arith.mulf %135, %135 : vector<8x8xf32>
    %cst_93 = arith.constant dense<0.000000e+00> : vector<8xf32>
    %143 = vector.multi_reduction <add>, %142, %cst_93 [1] : vector<8x8xf32> to vector<8xf32>
    %144 = vector.shape_cast %143 : vector<8xf32> to vector<8x1xf32>
    %145 = arith.addf %134, %144 : vector<8x1xf32>
    %c0_94 = arith.constant 0 : index
    %c0_95 = arith.constant 0 : index
    %c0_96 = arith.constant 0 : index
    %146 = vector.load %arg5[%c0_94, %c0_95, %c0_96] : memref<1x8x2xf32, #tpu.memory_space<vmem>>, vector<1x8x1xf32>
    %147 = vector.shape_cast %146 : vector<1x8x1xf32> to vector<8x1xf32>
    %148 = vector.shape_cast %141 : vector<8x1xf32> to vector<1x8x1xf32>
    tpu.vector_store %arg5[%c0_94, %c0_95, %c0_96], %148 {strides = array<i32>} : memref<1x8x2xf32, #tpu.memory_space<vmem>>, vector<1x8x1xf32>,
    %c0_97 = arith.constant 0 : index
    %c0_98 = arith.constant 0 : index
    %c1_99 = arith.constant 1 : index
    %149 = vector.load %arg5[%c0_97, %c0_98, %c1_99] : memref<1x8x2xf32, #tpu.memory_space<vmem>>, vector<1x8x1xf32>
    %150 = vector.shape_cast %149 : vector<1x8x1xf32> to vector<8x1xf32>
    %151 = vector.shape_cast %145 : vector<8x1xf32> to vector<1x8x1xf32>
    tpu.vector_store %arg5[%c0_97, %c0_98, %c1_99], %151 {strides = array<i32>} : memref<1x8x2xf32, #tpu.memory_space<vmem>>, vector<1x8x1xf32>,
    return
  }
  func.func @transform_0(%arg0: i32) -> (i32, i32, i32, i32) {
    %c0_i32 = arith.constant 0 : i32
    %c0_i32_0 = arith.constant 0 : i32
    %c0_i32_1 = arith.constant 0 : i32
    %c0_i32_2 = arith.constant 0 : i32
    return %arg0, %c0_i32, %c0_i32_0, %c0_i32_1 : i32, i32, i32, i32
  }
  func.func @transform_1(%arg0: i32) -> (i32, i32, i32) {
    %c0_i32 = arith.constant 0 : i32
    %c0_i32_0 = arith.constant 0 : i32
    %c0_i32_1 = arith.constant 0 : i32
    %c0_i32_2 = arith.constant 0 : i32
    return %c0_i32, %c0_i32_0, %c0_i32_1 : i32, i32, i32
  }
  func.func @transform_2(%arg0: i32) -> (i32, i32) {
    %c0_i32 = arith.constant 0 : i32
    %c0_i32_0 = arith.constant 0 : i32
    %c0_i32_1 = arith.constant 0 : i32
    return %c0_i32, %c0_i32_0 : i32, i32
  }
  func.func @transform_3(%arg0: i32) -> (i32, i32, i32) {
    %c0_i32 = arith.constant 0 : i32
    %c0_i32_0 = arith.constant 0 : i32
    %c0_i32_1 = arith.constant 0 : i32
    return %arg0, %c0_i32, %c0_i32_0 : i32, i32, i32
  }
  func.func @transform_4(%arg0: i32) -> (i32, i32, i32) {
    %c0_i32 = arith.constant 0 : i32
    %c0_i32_0 = arith.constant 0 : i32
    %c0_i32_1 = arith.constant 0 : i32
    return %arg0, %c0_i32, %c0_i32_0 : i32, i32, i32
  }
}

module attributes {stable_mosaic.version = 11 : i64} {
  func.func @_bn_dsconv_add_relu_kernel(%arg0: i32, %arg1: memref<1x8x64xf32, #tpu.memory_space<vmem>>, %arg2: memref<1x4x64xbf16, #tpu.memory_space<vmem>>, %arg3: memref<8x4xbf16, #tpu.memory_space<vmem>>, %arg4: memref<8x1xf32, #tpu.memory_space<vmem>>, %arg5: memref<8x2xf32, #tpu.memory_space<vmem>>, %arg6: memref<1x8x64xf32, #tpu.memory_space<vmem>>) attributes {dimension_semantics = [#tpu.dimension_semantics<parallel>], iteration_bounds = array<i64: 2>, scalar_prefetch = 0 : i64, scratch_operands = 0 : i64, tpu.core_type = #tpu.core_type<tc>, window_params = [{transform_indices = @transform_0, window_bounds = array<i64: 1, 8, 64>}, {transform_indices = @transform_1, window_bounds = array<i64: 1, 4, 64>}, {pipeline_mode = #tpu.pipeline_mode<synchronous>, transform_indices = @transform_2, window_bounds = array<i64: 8, 4>}, {pipeline_mode = #tpu.pipeline_mode<synchronous>, transform_indices = @transform_3, window_bounds = array<i64: 8, 1>}, {pipeline_mode = #tpu.pipeline_mode<synchronous>, transform_indices = @transform_4, window_bounds = array<i64: 8, 2>}, {transform_indices = @transform_5, window_bounds = array<i64: 1, 8, 64>}]} {
    %c0 = arith.constant 0 : index
    %c0_0 = arith.constant 0 : index
    %0 = vector.load %arg5[%c0, %c0_0] : memref<8x2xf32, #tpu.memory_space<vmem>>, vector<8x1xf32>
    %c0_1 = arith.constant 0 : index
    %c1 = arith.constant 1 : index
    %1 = vector.load %arg5[%c0_1, %c1] : memref<8x2xf32, #tpu.memory_space<vmem>>, vector<8x1xf32>
    %c0_2 = arith.constant 0 : index
    %c0_3 = arith.constant 0 : index
    %2 = vector.load %arg3[%c0_2, %c0_3] : memref<8x4xbf16, #tpu.memory_space<vmem>>, vector<8x4xbf16>
    %c0_4 = arith.constant 0 : index
    %c0_5 = arith.constant 0 : index
    %c0_6 = arith.constant 0 : index
    %3 = vector.load %arg2[%c0_4, %c0_5, %c0_6] : memref<1x4x64xbf16, #tpu.memory_space<vmem>>, vector<1x4x64xbf16>
    %4 = vector.shape_cast %3 : vector<1x4x64xbf16> to vector<4x64xbf16>
    %cst = arith.constant dense<0.000000e+00> : vector<8x64xf32>
    %5 = tpu.matmul %2, %4, %cst {dimension_numbers = #tpu.dot_dimension_numbers<[1], [0], [0], [1], [0, 0, 1, 1], [], []>} : vector<8x4xbf16>, vector<4x64xbf16>, vector<8x64xf32> -> vector<8x64xf32>
    %c0_7 = arith.constant 0 : index
    %c0_8 = arith.constant 0 : index
    %6 = vector.load %arg4[%c0_7, %c0_8] : memref<8x1xf32, #tpu.memory_space<vmem>>, vector<8x1xf32>
    %7 = vector.broadcast %6 : vector<8x1xf32> to vector<8x64xf32>
    %8 = arith.addf %5, %7 : vector<8x64xf32>
    %c0_9 = arith.constant 0 : index
    %c0_10 = arith.constant 0 : index
    %c0_11 = arith.constant 0 : index
    %9 = vector.load %arg1[%c0_9, %c0_10, %c0_11] : memref<1x8x64xf32, #tpu.memory_space<vmem>>, vector<1x8x64xf32>
    %10 = vector.shape_cast %9 : vector<1x8x64xf32> to vector<8x64xf32>
    %11 = vector.broadcast %0 : vector<8x1xf32> to vector<8x64xf32>
    %12 = arith.mulf %10, %11 : vector<8x64xf32>
    %13 = vector.broadcast %1 : vector<8x1xf32> to vector<8x64xf32>
    %14 = arith.addf %12, %13 : vector<8x64xf32>
    %15 = arith.addf %14, %8 : vector<8x64xf32>
    %cst_12 = arith.constant 0.000000e+00 : f32
    %16 = vector.broadcast %cst_12 : f32 to vector<8x64xf32>
    %17 = arith.maximumf %15, %16 : vector<8x64xf32>
    %c0_13 = arith.constant 0 : index
    %c0_14 = arith.constant 0 : index
    %c0_15 = arith.constant 0 : index
    %18 = vector.load %arg6[%c0_13, %c0_14, %c0_15] : memref<1x8x64xf32, #tpu.memory_space<vmem>>, vector<1x8x64xf32>
    %19 = vector.shape_cast %18 : vector<1x8x64xf32> to vector<8x64xf32>
    %20 = vector.shape_cast %17 : vector<8x64xf32> to vector<1x8x64xf32>
    tpu.vector_store %arg6[%c0_13, %c0_14, %c0_15], %20 {strides = array<i32>} : memref<1x8x64xf32, #tpu.memory_space<vmem>>, vector<1x8x64xf32>,
    return
  }
  func.func @transform_0(%arg0: i32) -> (i32, i32, i32) {
    %c0_i32 = arith.constant 0 : i32
    %c0_i32_0 = arith.constant 0 : i32
    %c0_i32_1 = arith.constant 0 : i32
    return %arg0, %c0_i32, %c0_i32_0 : i32, i32, i32
  }
  func.func @transform_1(%arg0: i32) -> (i32, i32, i32) {
    %c0_i32 = arith.constant 0 : i32
    %c0_i32_0 = arith.constant 0 : i32
    %c0_i32_1 = arith.constant 0 : i32
    return %arg0, %c0_i32, %c0_i32_0 : i32, i32, i32
  }
  func.func @transform_2(%arg0: i32) -> (i32, i32) {
    %c0_i32 = arith.constant 0 : i32
    %c0_i32_0 = arith.constant 0 : i32
    %c0_i32_1 = arith.constant 0 : i32
    return %c0_i32, %c0_i32_0 : i32, i32
  }
  func.func @transform_3(%arg0: i32) -> (i32, i32) {
    %c0_i32 = arith.constant 0 : i32
    %c0_i32_0 = arith.constant 0 : i32
    %c0_i32_1 = arith.constant 0 : i32
    return %c0_i32, %c0_i32_0 : i32, i32
  }
  func.func @transform_4(%arg0: i32) -> (i32, i32) {
    %c0_i32 = arith.constant 0 : i32
    %c0_i32_0 = arith.constant 0 : i32
    %c0_i32_1 = arith.constant 0 : i32
    return %c0_i32, %c0_i32_0 : i32, i32
  }
  func.func @transform_5(%arg0: i32) -> (i32, i32, i32) {
    %c0_i32 = arith.constant 0 : i32
    %c0_i32_0 = arith.constant 0 : i32
    %c0_i32_1 = arith.constant 0 : i32
    return %arg0, %c0_i32, %c0_i32_0 : i32, i32, i32
  }
}

</mosaic_0001>

<bundles_post_ra>
// kernel: resid_block.3
= control target key start
LH: loop header
LB: loop body
LE: loop exit
PB: predicated region body
PF: predicated region fallthrough
CT: control target
= control target key end

     0   :  { %s1138_s15 = smov 0   ;;  %s1300_s0 = inlined_call_operand.vmem [shape: bf16[2,4,4,128], index: 0, kind: input, shape index: {}]   ;;  %s1301_s1 = inlined_call_operand.vmem [shape: bf16[9,8,4], index: 1, kind: input, shape index: {}]   ;;  %s1302_s2 = inlined_call_operand.vmem [shape: f32[8,1], index: 2, kind: input, shape index: {}]   ;;  %s1303_s3 = inlined_call_operand.vmem [shape: f32[2,8,64], index: 3, kind: output, shape index: {0}]   ;;  %s1304_s4 = inlined_call_operand.vmem [shape: f32[2,8,2], index: 4, kind: output, shape index: {1}]  }
   0x1 LB: > { %s949_s16 = sadd.s32 4294967295, %s1092_s15   ;;  %p953_p0 = scmp.ge.s32.totalorder %s1092_s15, 1  ;;  %s1092_s15 = sphi %s1138_s15, %s15_s15  }
   0x2   : > { %p165_p1 = scmp.lt.s32.totalorder %s1092_s15, 3 }
   0x4   : > { %p166_p2 = pnand %p953_p0, %p165_p1 }
   0x5   : > { %p194_p3 = scmp.lt.s32.totalorder (!%p166_p2), %s949_s16, 1  ;;  %v314_v0 = vlaneseq (!%p166_p2)  ;;  %v1094_v1 = vmov (!%p166_p2), 1983009808   ;;  %v1095_v3 = vmov (!%p166_p2), 0.0   ;;  %vm1096_vm0 = vmmov (!%p166_p2), 0   ;;  %s1097_s21 = smov (!%p166_p2), 119  }
   0x6   : > { %169 = sbr.rel (%p166_p2) target bundleno = 719 (0x2cf), region = 32  ;;  %v312_v2 = vunpack.c.l.s4 (!%p166_p2), %v1094_v1  ;;  %1003 = vmatprep.subr.bf16.mxu0 (!%p166_p2), %v1095_v3  ;;  %1009 = vmatprep.subr.bf16.mxu1 (!%p166_p2), %v1095_v3  ;;  %vm218_vm1 = vcmask (!%p166_p2), 1041408   ;;  %v959_v14 = vld [vmem:[%s1301_s1 + $0x4] sm:$0xf] (!%p166_p2)  ;;  %vm214_vm2 = vcmask (!%p166_p2), 31744   ;;  %s1098_s24 = smov (!%p166_p2), 127  }
   0x7   : > { %v315_v4 = vshrl.u32 (!%p166_p2), %v314_v0, 7  ;;  %1005 = vmatprep.mubr.msk.bf16.mxu0 (!%p166_p2), %vm1096_vm0, %v1095_v3  ;;  %1011 = vmatprep.mubr.msk.bf16.mxu1 (!%p166_p2), %vm1096_vm0, %v1095_v3  ;;  %v209_v17 = vld [vmem:[%s1301_s1] sm:$0xf] (!%p166_p2)  ;;  %s1099_s27 = smov (!%p166_p2), 118   ;;  %v965_v19 = vld [vmem:[%s1301_s1 + $0xc] sm:$0xf] (!%p166_p2) }
   0x8   : > { %v313_v5 = vunpack.c.0.s8 (!%p166_p2), %v312_v2  ;;  %v708_v20 = vld [vmem:[%s1302_s2] sm:$0xff] (!%p166_p2)  ;;  %v1100_v21 = vmov (!%p166_p2), 0   ;;  %v962_v26 = vld [vmem:[%s1301_s1 + $0x8] sm:$0xf] (!%p166_p2)  ;;  %v970_v31 = vld [vmem:[%s1301_s1 + $0x14] sm:$0xf] (!%p166_p2) }
   0x9   : > { %1084 = vset.pattern.permute.xlu1 (!%p166_p2), %v1100_v21  ;;  %1085 = vset.pattern.permute.xlu0 (!%p166_p2), %v1100_v21  ;;  %v968_v33 = vld [vmem:[%s1301_s1 + $0x10] sm:$0xf] (!%p166_p2)  ;;  %v976_v35 = vld [vmem:[%s1301_s1 + $0x1c] sm:$0xf] (!%p166_p2)  ;;  %v972_v37 = vld [vmem:[%s1301_s1 + $0x18] sm:$0xf] (!%p166_p2) }
   0xa   : > { %v316_v6 = vsub.s32 (!%p166_p2), %v313_v5, %v315_v4  ;;  %v979_v39 = vld [vmem:[%s1301_s1 + $0x20] sm:$0xf] (!%p166_p2)  ;;  %vm715_vm3 = vcmask (!%p166_p2), 64512   ;;  %s1101_s25 = smov (!%p166_p2), 110   ;;  %s1102_s26 = smov (!%p166_p2), 126   ;;  %vm730_vm4 = vcmask (!%p166_p2), 130112  }
   0xb   : > { %s1104_s28 = smov (!%p166_p2), 125   ;;  %s1105_s29 = smov (!%p166_p2), 92   ;;  %vm750_vm5 = vcmask (!%p166_p2), 195712   ;;  %vm769_vm6 = vcmask (!%p166_p2), 261312   ;;  %vm788_vm7 = vcmask (!%p166_p2), 326912   ;;  %vm807_vm8 = vcmask (!%p166_p2), 392512  }
   0xc   : > { %s1106_s30 = smov (!%p166_p2), 124   ;;  %s1108_s5 = smov (!%p166_p2), 123   ;;  %vm826_vm9 = vcmask (!%p166_p2), 458112   ;;  %vm861_vm10 = vcmask (!%p166_p2), 7168   ;;  %vm863_vm11 = vcmask (!%p166_p2), 15368   ;;  %vm845_vm12 = vcmask (!%p166_p2), 523712  }
   0xd   : > { %s1306_s16 = smov (!%p194_p3, %s949_s16), 1  ;;  %s1109_s6 = smov 74  }
   0xe   : > { %s1152_s17 = sshll.u32 %s1306_s16, 3  ;;  %s1110_s7 = smov 65  }
   0xf   : > { %s1158_s20 = scalar_lea.vmem %s1300_s0, %s1152_s17  ;;  %s1243_s23 = scalar_lea.vmem %s1303_s3, %s1152_s17 }
  0x10   : > { %v208_v7 = vld [vmem:[%s1158_s20] sm:$0x3]  ;;  %v964_v8 = vld [vmem:[%s1158_s20 + $0x4] sm:$0x3]  ;;  %v958_v9 = vld [vmem:[%s1158_s20 + $0x2] sm:$0x3]  ;;  %s206_s11 = scalar_lea.vmem %s1304_s4, %s1152_s17 }
  0x11   : > { %v317_v10 = vrot.slane %v208_v7, %v316_v6  ;;  %v973_v11 = vld.sshfl [vmem:[%s1158_s20] sm:$0x3 pattern:$0x76325410]  ;;  %v220_v12 = vsel %vm218_vm1, %v958_v9, 0  ;;  %v266_v13 = vsel %vm218_vm1, %v208_v7, 0  ;;  %v478_v15 = vrot.slane %v964_v8, %v316_v6 }
  0x12   : > { %539 = vrot.lane.b32.xlu1 %v973_v11, %s1097_s21  ;;  %1004 = vmatpush3.bf16.msra.mxu0 %v220_v12  ;;  %v977_v16 = vld.sshfl [vmem:[%s1158_s20 + $0x2] sm:$0x3 pattern:$0x76325410]  ;;  %v375_v18 = vsel %vm218_vm1, %v964_v8, 0  ;;  %s1111_s8 = smov 122  }
  0x13   : > { %318 = vrot.lane.b32.xlu0 %v317_v10, %s1098_s24  ;;  %1010 = vmatpush3.bf16.msra.mxu1 %v266_v13  ;;  %v967_v24 = vld [vmem:[%s1158_s20 + $0x6] sm:$0x3] }
  0x14   : > { %1015 = vmatprep.subr.bf16.mxu0 %v1095_v3  ;;  %1021 = vmatprep.subr.bf16.mxu1 %v1095_v3  ;;  %v426_v27 = vsel %vm218_vm1, %v967_v24, 0 }
  0x15   : > { %1006 = vmatmul.mubr.msk.bf16.vlgmr.msra.gmra.mrb[0].mxu0 %vm214_vm2, %v959_v14 }
  0x16   : > { %599 = vrot.lane.b32.xlu1 %v977_v16, %s1097_s21  ;;  %1012 = vmatmul.mubr.msk.bf16.vlgmr.msra.gmra.mrb[0].mxu1 %vm214_vm2, %v209_v17 }
  0x17   : > { %479 = vrot.lane.b32.xlu0 %v478_v15, %s1098_s24  ;;  %1017 = vmatprep.mubr.msk.bf16.mxu0 %vm1096_vm0, %v1095_v3 }
  0x18   : > { %1022 = vmatpush3.bf16.msra.mxu1 %v375_v18  ;;  %1023 = vmatprep.mubr.msk.bf16.mxu1 %vm1096_vm0, %v1095_v3 }
  0x19   : > { %1033 = vmatprep.subr.bf16.mxu1 %v1095_v3 }
  0x1a   : > { %711 = vperm.xlu1 %1084, %v708_v20  }
  0x1b   : > { %659 = vrot.lane.b32.xlu0 %v973_v11, %s1099_s27  ;;  %s1103_s27 = smov 101  }
  0x1e   : > { %1024 = vmatmul.mubr.msk.bf16.vlgmr.msra.gmra.mrb[4].mxu1 %vm214_vm2, %v965_v19 }
  0x1f   : > { %1035 = vmatprep.mubr.msk.bf16.mxu1 %vm1096_vm0, %v1095_v3 }
  0x84   : > { %v540_v22 = vpop.permute.xlu1 %539 }
  0x85   : > { %v319_v23 = vpop.permute.xlu0 %318  ;;  %v545_v34 = vsel %vm218_vm1, %v540_v22, 0 }
  0x86   : > { %v324_v25 = vsel %vm218_vm1, %v319_v23, 0 }
  0x87   : > { %1016 = vmatpush3.bf16.msra.mxu0 %v324_v25 }
  0x88   : > { %1027 = vmatprep.subr.bf16.mxu0 %v1095_v3  ;;  %v600_v30 = vpop.permute.xlu1 %599 }
  0x89   : > { %v480_v28 = vpop.permute.xlu0 %479  ;;  %v605_v32 = vsel %vm218_vm1, %v600_v30, 0 }
  0x8a   : > { %1018 = vmatmul.mubr.msk.bf16.vlgmr.msra.gmra.mrb[4].mxu0 %vm214_vm2, %v962_v26  ;;  %v485_v29 = vsel %vm218_vm1, %v480_v28, 0 }
  0x8b   : > { %1028 = vmatpush3.bf16.msra.mxu0 %v426_v27  ;;  %1029 = vmatprep.mubr.msk.bf16.mxu0 %vm1096_vm0, %v1095_v3 }
  0x8c   : > { %1034 = vmatpush3.bf16.msra.mxu1 %v485_v29  ;;  %1039 = vmatprep.subr.bf16.mxu0 %v1095_v3 }
  0x8d   : > { %1045 = vmatprep.subr.bf16.mxu1 %v1095_v3  ;;  %v660_v36 = vpop.permute.xlu0 %659 }
  0x8e   : > { %v665_v38 = vsel %vm218_vm1, %v660_v36, 0 }
  0x8f   : > { %1036 = vmatmul.mubr.msk.bf16.vlgmr.msra.gmra.mrb[8].mxu1 %vm214_vm2, %v970_v31 }
  0x90   : > { %1046 = vmatpush3.bf16.msra.mxu1 %v605_v32  ;;  %1047 = vmatprep.mubr.msk.bf16.mxu1 %vm1096_vm0, %v1095_v3 }
  0x92   : > { %1030 = vmatmul.mubr.msk.bf16.vlgmr.msra.gmra.mrb[8].mxu0 %vm214_vm2, %v968_v33 }
  0x93   : > { %1040 = vmatpush3.bf16.msra.mxu0 %v545_v34  ;;  %1041 = vmatprep.mubr.msk.bf16.mxu0 %vm1096_vm0, %v1095_v3 }
  0x94   : > { %1051 = vmatprep.subr.bf16.mxu0 %v1095_v3 }
  0x97   : > { %1048 = vmatmul.mubr.msk.bf16.vlgmr.msra.gmra.mrb[12].mxu1 %vm214_vm2, %v976_v35 }
  0x99   : > { %v712_v16 = vpop.permute.xlu1 %711 }
  0x9a   : > { %1042 = vmatmul.mubr.msk.bf16.vlgmr.msra.gmra.mrb[12].mxu0 %vm214_vm2, %v972_v37 }
  0x9b   : > { %1052 = vmatpush3.bf16.msra.mxu0 %v665_v38  ;;  %1053 = vmatprep.mubr.msk.bf16.mxu0 %vm1096_vm0, %v1095_v3 }
  0xa2   : > { %1054 = vmatmul.mubr.msk.bf16.vlgmr.msra.gmra.mrb[16].mxu0 %vm214_vm2, %v979_v39 }
  0xe8   : > { %v256_v40 = vpop.f32.mrb[0].mxu0 }
  0xe9   : > { %v1007_v41 = vpop.f32.mrb[1].mxu0  ;;  %v302_v42 = vpop.f32.mrb[0].mxu1 }
  0xea   : > { %v259_v43 = vpop.f32.mrb[2].mxu0  ;;  %v303_v44 = vadd.f32 %v302_v42, %v256_v40  ;;  %v1013_v45 = vpop.f32.mrb[1].mxu1 }
  0xeb   : > { %v1008_v46 = vpop.f32.mrb[3].mxu0  ;;  %v305_v47 = vpop.f32.mrb[2].mxu1 }
  0xec   : > { %v1014_v48 = vpop.f32.mrb[3].mxu1 }
  0xf1   : > { %v411_v49 = vpop.f32.mrb[4].mxu1 }
  0xf2   : > { %v1025_v50 = vpop.f32.mrb[5].mxu1 }
  0xf3   : > { %v414_v51 = vpop.f32.mrb[6].mxu1 }
  0xf4   : > { %v1026_v52 = vpop.f32.mrb[7].mxu1 }
 0x15d   : > { %v360_v53 = vpop.f32.mrb[4].mxu0 }
 0x15e   : > { %v366_v54 = vadd.f32 %v360_v53, %v303_v44  ;;  %v1019_v55 = vpop.f32.mrb[5].mxu0 }
 0x15f   : > { %v363_v56 = vpop.f32.mrb[6].mxu0 }
 0x160   : > { %v417_v57 = vadd.f32 %v411_v49, %v366_v54  ;;  %v1020_v58 = vpop.f32.mrb[7].mxu0 }
 0x162   : > { %v521_v59 = vpop.f32.mrb[8].mxu1 }
 0x163   : > { %v1037_v60 = vpop.f32.mrb[9].mxu1 }
 0x164   : > { %v524_v61 = vpop.f32.mrb[10].mxu1 }
 0x165   : > { %v462_v62 = vpop.f32.mrb[8].mxu0  ;;  %v1038_v63 = vpop.f32.mrb[11].mxu1 }
 0x166   : > { %v468_v0 = vadd.f32 %v462_v62, %v417_v57  ;;  %v1031_v1 = vpop.f32.mrb[9].mxu0 }
 0x167   : > { %v465_v2 = vpop.f32.mrb[10].mxu0 }
 0x168   : > { %v527_v3 = vadd.f32 %v521_v59, %v468_v0  ;;  %v1032_v4 = vpop.f32.mrb[11].mxu0 }
 0x16a   : > { %v641_v5 = vpop.f32.mrb[12].mxu1 }
 0x16b   : > { %v1049_v6 = vpop.f32.mrb[13].mxu1 }
 0x16c   : > { %v644_v7 = vpop.f32.mrb[14].mxu1 }
 0x16d   : > { %v581_v8 = vpop.f32.mrb[12].mxu0  ;;  %v1050_v9 = vpop.f32.mrb[15].mxu1 }
 0x16e   : > { %v587_v10 = vadd.f32 %v581_v8, %v527_v3  ;;  %v1043_v11 = vpop.f32.mrb[13].mxu0 }
 0x16f   : > { %v584_v12 = vpop.f32.mrb[14].mxu0 }
 0x170   : > { %v647_v13 = vadd.f32 %v641_v5, %v587_v10  ;;  %v1044_v14 = vpop.f32.mrb[15].mxu0 }
 0x175   : > { %v701_v15 = vpop.f32.mrb[16].mxu0 }
 0x176   : > { %v707_v17 = vadd.f32 %v701_v15, %v647_v13  ;;  %v1055_v18 = vpop.f32.mrb[17].mxu0 }
 0x177   : > { %v704_v19 = vpop.f32.mrb[18].mxu0 }
 0x178   : > { %v1245_v20 = vadd.f32 %v712_v16, %v707_v17  ;;  %v1056_v21 = vpop.f32.mrb[19].mxu0 }
 0x17a   : > { %732 = vrot.lane.b32.xlu1 %v1245_v20, %s1097_s21  ;;  %727 = vrot.lane.b32.xlu0 %v1245_v20, %s1098_s24  ;;  %716 = vst.msk [vmem:[%s1243_s23] sm:$0xff] %vm715_vm3, %v1245_v20  ;;  %s1107_s24 = smov 83   ;;  %v721_v22 = vmul.f32 %v1245_v20, %v1245_v20  ;;  %v717_v23 = vsel %vm715_vm3, %v1245_v20, 0.0 }
 0x17c   : > { %v722_v24 = vsel %vm715_vm3, %v721_v22, 0.0 }
 0x17e   : > { %752 = vrot.lane.b32.xlu1 %v1245_v20, %s1101_s25  ;;  %747 = vrot.lane.b32.xlu0 %v1245_v20, %s1102_s26 }
 0x182   : > { %771 = vrot.lane.b32.xlu1 %v1245_v20, %s1103_s27  ;;  %766 = vrot.lane.b32.xlu0 %v1245_v20, %s1104_s28 }
 0x186   : > { %790 = vrot.lane.b32.xlu1 %v1245_v20, %s1105_s29  ;;  %785 = vrot.lane.b32.xlu0 %v1245_v20, %s1106_s30 }
 0x18a   : > { %809 = vrot.lane.b32.xlu1 %v1245_v20, %s1107_s24  ;;  %804 = vrot.lane.b32.xlu0 %v1245_v20, %s1108_s5 }
 0x18e   : > { %828 = vrot.lane.b32.xlu1 %v1245_v20, %s1109_s6 }
 0x192   : > { %847 = vrot.lane.b32.xlu1 %v1245_v20, %s1110_s7 }
 0x196   : > { %740 = vrot.lane.b32.xlu1 %v721_v22, %s1097_s21  ;;  %s1112_s21 = smov 121  }
 0x19a   : > { %759 = vrot.lane.b32.xlu1 %v721_v22, %s1101_s25 }
 0x19e   : > { %778 = vrot.lane.b32.xlu1 %v721_v22, %s1103_s27 }
 0x1a2   : > { %797 = vrot.lane.b32.xlu1 %v721_v22, %s1105_s29 }
 0x1a6   : > { %816 = vrot.lane.b32.xlu1 %v721_v22, %s1107_s24 }
 0x1a9   : > { %718 = vadd.xlane.f32.xlu0 %v717_v23 }
 0x1aa   : > { %835 = vrot.lane.b32.xlu1 %v721_v22, %s1109_s6 }
 0x1bf   : > { %854 = vrot.lane.b32.xlu0 %v721_v22, %s1110_s7 }
 0x1c3   : > { %823 = vrot.lane.b32.xlu0 %v1245_v20, %s1111_s8 }
 0x1ce   : > { %723 = vadd.xlane.f32.xlu1 %v722_v24 }
 0x1ec   : > { %v733_v25 = vpop.permute.xlu1 %732  ;;  %v728_v26 = vpop.permute.xlu0 %727 }
 0x1ed   : > { %731 = vst.msk [vmem:[%s1243_s23] sm:$0xff] %vm730_vm4, %v728_v26  ;;  %v735_v27 = vsel %vm715_vm3, %v733_v25, 0.0 }
 0x1ee   : > { %736 = vadd.xlane.f32.xlu0 %v735_v27 }
 0x1f0   : > { %v753_v28 = vpop.permute.xlu1 %752  ;;  %v748_v29 = vpop.permute.xlu0 %747 }
 0x1f1   : > { %751 = vst.msk [vmem:[%s1243_s23] sm:$0xff] %vm750_vm5, %v748_v29  ;;  %v755_v30 = vsel %vm715_vm3, %v753_v28, 0.0 }
 0x1f2   : > { %756 = vadd.xlane.f32.xlu0 %v755_v30 }
 0x1f4   : > { %v772_v31 = vpop.permute.xlu1 %771  ;;  %v767_v32 = vpop.permute.xlu0 %766 }
 0x1f5   : > { %770 = vst.msk [vmem:[%s1243_s23] sm:$0xff] %vm769_vm6, %v767_v32  ;;  %v774_v33 = vsel %vm715_vm3, %v772_v31, 0.0 }
 0x1f6   : > { %775 = vadd.xlane.f32.xlu0 %v774_v33 }
 0x1f8   : > { %v791_v34 = vpop.permute.xlu1 %790  ;;  %v786_v35 = vpop.permute.xlu0 %785 }
 0x1f9   : > { %789 = vst.msk [vmem:[%s1243_s23] sm:$0xff] %vm788_vm7, %v786_v35  ;;  %v793_v36 = vsel %vm715_vm3, %v791_v34, 0.0 }
 0x1fa   : > { %794 = vadd.xlane.f32.xlu0 %v793_v36 }
 0x1fc   : > { %v810_v37 = vpop.permute.xlu1 %809  ;;  %v805_v38 = vpop.permute.xlu0 %804 }
 0x1fd   : > { %808 = vst.msk [vmem:[%s1243_s23] sm:$0xff] %vm807_vm8, %v805_v38  ;;  %v812_v39 = vsel %vm715_vm3, %v810_v37, 0.0 }
 0x1fe   : > { %813 = vadd.xlane.f32.xlu0 %v812_v39 }
 0x200   : > { %v829_v40 = vpop.permute.xlu1 %828 }
 0x201   : > { %v831_v41 = vsel %vm715_vm3, %v829_v40, 0.0 }
 0x202   : > { %832 = vadd.xlane.f32.xlu0 %v831_v41 }
 0x204   : > { %v848_v42 = vpop.permute.xlu1 %847 }
 0x205   : > { %v850_v43 = vsel %vm715_vm3, %v848_v42, 0.0 }
 0x206   : > { %851 = vadd.xlane.f32.xlu1 %v850_v43 }
 0x208   : > { %v741_v44 = vpop.permute.xlu1 %740 }
 0x209   : > { %v743_v45 = vsel %vm715_vm3, %v741_v44, 0.0 }
 0x20a   : > { %744 = vadd.xlane.f32.xlu1 %v743_v45 }
 0x20c   : > { %v760_v46 = vpop.permute.xlu1 %759 }
 0x20d   : > { %v762_v47 = vsel %vm715_vm3, %v760_v46, 0.0 }
 0x20e   : > { %763 = vadd.xlane.f32.xlu1 %v762_v47 }
 0x210   : > { %v779_v48 = vpop.permute.xlu1 %778 }
 0x211   : > { %v781_v49 = vsel %vm715_vm3, %v779_v48, 0.0 }
 0x212   : > { %782 = vadd.xlane.f32.xlu1 %v781_v49 }
 0x214   : > { %v798_v50 = vpop.permute.xlu1 %797 }
 0x215   : > { %v800_v51 = vsel %vm715_vm3, %v798_v50, 0.0 }
 0x216   : > { %801 = vadd.xlane.f32.xlu1 %v800_v51 }
 0x218   : > { %v817_v52 = vpop.permute.xlu1 %816 }
 0x219   : > { %v819_v53 = vsel %vm715_vm3, %v817_v52, 0.0 }
 0x21a   : > { %820 = vadd.xlane.f32.xlu1 %v819_v53 }
 0x21c   : > { %v836_v54 = vpop.permute.xlu1 %835 }
 0x21d   : > { %v838_v55 = vsel %vm715_vm3, %v836_v54, 0.0 }
 0x21e   : > { %839 = vadd.xlane.f32.xlu1 %v838_v55 }
 0x236   : > { %v719_v56 = vpop.xlane.xlu0 %718 }
 0x23a   : > { %v855_v57 = vpop.permute.xlu0 %854 }
 0x23b   : > { %v857_v58 = vsel %vm715_vm3, %v855_v57, 0.0 }
 0x23c   : > { %858 = vadd.xlane.f32.xlu1 %v857_v58 }
 0x23e   : > { %v824_v59 = vpop.permute.xlu0 %823 }
 0x23f   : > { %827 = vst.msk [vmem:[%s1243_s23] sm:$0xff] %vm826_vm9, %v824_v59 }
 0x24d   : > { %842 = vrot.lane.b32.xlu1 %v1245_v20, %s1112_s21 }
 0x25b   : > { %v724_v5 = vpop.xlane.xlu1 %723 }
 0x27b   : > { %v737_v60 = vpop.xlane.xlu0 %736 }
 0x27c   : > { %v738_v0 = vadd.f32 %v737_v60, %v719_v56 }
 0x27f   : > { %v757_v61 = vpop.xlane.xlu0 %756 }
 0x280   : > { %v758_v1 = vadd.f32 %v757_v61, %v738_v0 }
 0x283   : > { %v776_v62 = vpop.xlane.xlu0 %775 }
 0x284   : > { %v777_v3 = vadd.f32 %v776_v62, %v758_v1 }
 0x287   : > { %v795_v63 = vpop.xlane.xlu0 %794 }
 0x288   : > { %v796_v4 = vadd.f32 %v795_v63, %v777_v3 }
 0x28b   : > { %v814_v2 = vpop.xlane.xlu0 %813 }
 0x28c   : > { %v815_v7 = vadd.f32 %v814_v2, %v796_v4 }
 0x28f   : > { %v833_v6 = vpop.xlane.xlu0 %832 }
 0x290   : > { %v834_v8 = vadd.f32 %v833_v6, %v815_v7 }
 0x293   : > { %v852_v9 = vpop.xlane.xlu1 %851 }
 0x294   : > { %v853_v10 = vadd.f32 %v852_v9, %v834_v8 }
 0x296   : > { %862 = vst.msk [vmem:[%s206_s11] sm:$0xff] %vm861_vm10, %v853_v10 }
 0x297   : > { %v745_v11 = vpop.xlane.xlu1 %744 }
 0x298   : > { %v746_v15 = vadd.f32 %v745_v11, %v724_v5 }
 0x29b   : > { %v764_v12 = vpop.xlane.xlu1 %763 }
 0x29c   : > { %v765_v17 = vadd.f32 %v764_v12, %v746_v15 }
 0x29f   : > { %v783_v13 = vpop.xlane.xlu1 %782 }
 0x2a0   : > { %v784_v18 = vadd.f32 %v783_v13, %v765_v17 }
 0x2a3   : > { %v802_v14 = vpop.xlane.xlu1 %801 }
 0x2a4   : > { %v803_v19 = vadd.f32 %v802_v14, %v784_v18 }
 0x2a7   : > { %v821_v16 = vpop.xlane.xlu1 %820 }
 0x2a8   : > { %v822_v21 = vadd.f32 %v821_v16, %v803_v19 }
 0x2ab   : > { %v840_v20 = vpop.xlane.xlu1 %839 }
 0x2ac   : > { %v841_v22 = vadd.f32 %v840_v20, %v822_v21 }
 0x2c9   : > { %v859_v23 = vpop.xlane.xlu1 %858 }
 0x2ca   : > { %v860_v24 = vadd.f32 %v859_v23, %v841_v22 }
 0x2cc   : > { %864 = vst.msk [vmem:[%s206_s11] sm:$0xff] %vm863_vm11, %v860_v24 }
 0x2cd   : > { %v843_v25 = vpop.permute.xlu1 %842 }
 0x2ce   : > { %846 = vst.msk [vmem:[%s1243_s23] sm:$0xff] %vm845_vm12, %v843_v25 }
 0x2cf PF: > { %s15_s15 = sadd.s32 1, %s1092_s15  }
 0x2d0   : > { %p12_p4 = scmp.ge.s32.totalorder %s15_s15, 4  }
 0x2d2   :  { %14 = sbr.rel (!%p12_p4) target bundleno = 1 (0x1), region = 85 }

// kernel: resid_block.4
= control target key start
LH: loop header
LB: loop body
LE: loop exit
PB: predicated region body
PF: predicated region fallthrough
CT: control target
= control target key end

     0   :  { %s1085_s15 = smov 0   ;;  %s1244_s0 = inlined_call_operand.vmem [shape: bf16[2,1,8,128], index: 0, kind: input, shape index: {}]   ;;  %s1245_s1 = inlined_call_operand.vmem [shape: bf16[9,8,8], index: 1, kind: input, shape index: {}]   ;;  %s1246_s2 = inlined_call_operand.vmem [shape: f32[8,1], index: 2, kind: input, shape index: {}]   ;;  %s1247_s3 = inlined_call_operand.vmem [shape: f32[2,8,64], index: 3, kind: output, shape index: {0}]   ;;  %s1248_s4 = inlined_call_operand.vmem [shape: f32[2,8,2], index: 4, kind: output, shape index: {1}]  }
   0x1 LB: > { %s902_s16 = sadd.s32 4294967295, %s1038_s15   ;;  %p906_p0 = scmp.ge.s32.totalorder %s1038_s15, 1  ;;  %s1038_s15 = sphi %s1085_s15, %s15_s15  }
   0x2   : > { %p164_p1 = scmp.lt.s32.totalorder %s1038_s15, 3 }
   0x4   : > { %p165_p2 = pnand %p906_p0, %p164_p1 }
   0x5   : > { %p192_p3 = scmp.lt.s32.totalorder (!%p165_p2), %s902_s16, 1  ;;  %v1040_v0 = vmov (!%p165_p2), 0.0   ;;  %vm1041_vm0 = vmmov (!%p165_p2), 0   ;;  %vm218_vm1 = vcmask (!%p165_p2), 1043456   ;;  %vm214_vm2 = vcmask (!%p165_p2), 64512   ;;  %s1042_s23 = smov (!%p165_p2), 127  }
   0x6   : > { %168 = sbr.rel (%p165_p2) target bundleno = 697 (0x2b9), region = 32  ;;  %948 = vmatprep.subr.bf16.mxu0 (!%p165_p2), %v1040_v0  ;;  %954 = vmatprep.subr.bf16.mxu1 (!%p165_p2), %v1040_v0  ;;  %v206_v4 = vld [vmem:[%s1245_s1] sm:$0xf] (!%p165_p2)  ;;  %s1043_s24 = smov (!%p165_p2), 118   ;;  %v1050_v6 = vmov (!%p165_p2), 0   ;;  %vm686_vm3 = vcmask (!%p165_p2), 130112  }
   0x7   : > { %950 = vmatprep.mubr.msk.bf16.mxu0 (!%p165_p2), %vm1041_vm0, %v1040_v0  ;;  %956 = vmatprep.mubr.msk.bf16.mxu1 (!%p165_p2), %vm1041_vm0, %v1040_v0  ;;  %s1044_s25 = smov (!%p165_p2), 126   ;;  %s1045_s26 = smov (!%p165_p2), 117   ;;  %v665_v5 = vld [vmem:[%s1246_s2] sm:$0xff] (!%p165_p2)  ;;  %v916_v12 = vld [vmem:[%s1245_s1 + $0xc] sm:$0xf] (!%p165_p2)  ;;  %vm706_vm4 = vcmask (!%p165_p2), 195712  }
   0x8   : > { %s1046_s27 = smov (!%p165_p2), 116   ;;  %s1047_s28 = smov (!%p165_p2), 108   ;;  %1030 = vset.pattern.permute.xlu0 (!%p165_p2), %v1050_v6  ;;  %v910_v11 = vld [vmem:[%s1245_s1 + $0x4] sm:$0xf] (!%p165_p2)  ;;  %v914_v18 = vld [vmem:[%s1245_s1 + $0x8] sm:$0xf] (!%p165_p2) }
   0x9   : > { %s1048_s29 = smov (!%p165_p2), 107   ;;  %s1049_s30 = smov (!%p165_p2), 106   ;;  %v920_v19 = vld [vmem:[%s1245_s1 + $0x14] sm:$0xf] (!%p165_p2)  ;;  %v918_v24 = vld [vmem:[%s1245_s1 + $0x10] sm:$0xf] (!%p165_p2) }
   0xa   : > { %v924_v25 = vld [vmem:[%s1245_s1 + $0x1c] sm:$0xf] (!%p165_p2)  ;;  %v922_v28 = vld [vmem:[%s1245_s1 + $0x18] sm:$0xf] (!%p165_p2)  ;;  %v926_v30 = vld [vmem:[%s1245_s1 + $0x20] sm:$0xf] (!%p165_p2) }
   0xb   : > { %s1051_s7 = smov (!%p165_p2), 124   ;;  %s1052_s8 = smov (!%p165_p2), 98   ;;  %vm725_vm5 = vcmask (!%p165_p2), 261312   ;;  %vm744_vm6 = vcmask (!%p165_p2), 326912   ;;  %vm760_vm7 = vcmask (!%p165_p2), 392512   ;;  %vm779_vm8 = vcmask (!%p165_p2), 458112  }
   0xc   : > { %s1053_s9 = smov (!%p165_p2), 122   ;;  %s1054_s10 = smov (!%p165_p2), 88   ;;  %vm814_vm9 = vcmask (!%p165_p2), 7168   ;;  %vm816_vm10 = vcmask (!%p165_p2), 15368   ;;  %vm798_vm11 = vcmask (!%p165_p2), 523712  }
   0xd   : > { %s1250_s16 = smov (!%p192_p3, %s902_s16), 1  ;;  %s1055_s11 = smov 120  }
   0xe   : > { %s907_s17 = sshll.u32 %s1250_s16, 2  ;;  %s1057_s12 = smov 78  }
   0xf   : > { %s195_s20 = scalar_lea.vmem %s1244_s0, %s907_s17  ;;  %s1058_s13 = smov 58  }
  0x10   : > { %v205_v1 = vld [vmem:[%s195_s20] sm:$0xf] }
  0x11   : > { %v911_v2 = vcombine.low %v205_v1, %v205_v1  ;;  %v266_v3 = vsel %vm218_vm1, %v205_v1, 0 }
  0x12   : > { %955 = vmatpush3.bf16.msra.mxu1 %v266_v3 }
  0x13   : > { %212 = vrot.lane.b32.xlu0 %v911_v2, %s1042_s23  ;;  %361 = vrot.lane.b32.xlu1 %v911_v2, %s1043_s24 }
  0x14   : > { %966 = vmatprep.subr.bf16.mxu1 %v1040_v0 }
  0x15   : > { %957 = vmatmul.mubr.msk.bf16.vlgmr.msra.gmra.mrb[0].mxu1 %vm214_vm2, %v206_v4 }
  0x16   : > { %968 = vmatprep.mubr.msk.bf16.mxu1 %vm1041_vm0, %v1040_v0 }
  0x17   : > { %310 = vrot.lane.b32.xlu0 %v911_v2, %s1044_s25  ;;  %412 = vrot.lane.b32.xlu1 %v911_v2, %s1045_s26 }
  0x1b   : > { %463 = vrot.lane.b32.xlu0 %v911_v2, %s1046_s27  ;;  %514 = vrot.lane.b32.xlu1 %v911_v2, %s1047_s28 }
  0x1f   : > { %565 = vrot.lane.b32.xlu0 %v911_v2, %s1048_s29  ;;  %616 = vrot.lane.b32.xlu1 %v911_v2, %s1049_s30  ;;  %s908_s29 = sshll.u32 %s1250_s16, 3 }
  0x20   : > { %s1184_s6 = scalar_lea.vmem %s1247_s3, %s908_s29  ;;  %s203_s14 = scalar_lea.vmem %s1248_s4, %s908_s29 }
  0x23   : > { %668 = vperm.xlu0 %1030, %v665_v5  }
  0x85   : > { %v213_v7 = vpop.permute.xlu0 %212  ;;  %v362_v8 = vpop.permute.xlu1 %361 }
  0x86   : > { %v220_v9 = vsel %vm218_vm1, %v213_v7, 0  ;;  %v367_v10 = vsel %vm218_vm1, %v362_v8, 0 }
  0x87   : > { %949 = vmatpush3.bf16.msra.mxu0 %v220_v9  ;;  %967 = vmatpush3.bf16.msra.mxu1 %v367_v10 }
  0x88   : > { %960 = vmatprep.subr.bf16.mxu0 %v1040_v0  ;;  %978 = vmatprep.subr.bf16.mxu1 %v1040_v0 }
  0x89   : > { %v311_v13 = vpop.permute.xlu0 %310  ;;  %v413_v15 = vpop.permute.xlu1 %412 }
  0x8a   : > { %v316_v14 = vsel %vm218_vm1, %v311_v13, 0  ;;  %951 = vmatmul.mubr.msk.bf16.vlgmr.msra.gmra.mrb[0].mxu0 %vm214_vm2, %v910_v11  ;;  %969 = vmatmul.mubr.msk.bf16.vlgmr.msra.gmra.mrb[4].mxu1 %vm214_vm2, %v916_v12  ;;  %v418_v20 = vsel %vm218_vm1, %v413_v15, 0 }
  0x8b   : > { %961 = vmatpush3.bf16.msra.mxu0 %v316_v14  ;;  %962 = vmatprep.mubr.msk.bf16.mxu0 %vm1041_vm0, %v1040_v0 }
  0x8c   : > { %972 = vmatprep.subr.bf16.mxu0 %v1040_v0  ;;  %980 = vmatprep.mubr.msk.bf16.mxu1 %vm1041_vm0, %v1040_v0 }
  0x8d   : > { %v464_v16 = vpop.permute.xlu0 %463  ;;  %v515_v23 = vpop.permute.xlu1 %514 }
  0x8e   : > { %v469_v17 = vsel %vm218_vm1, %v464_v16, 0  ;;  %v520_v26 = vsel %vm218_vm1, %v515_v23, 0 }
  0x8f   : > { %979 = vmatpush3.bf16.msra.mxu1 %v469_v17 }
  0x90   : > { %990 = vmatprep.subr.bf16.mxu1 %v1040_v0 }
  0x91   : > { %v566_v21 = vpop.permute.xlu0 %565  ;;  %v617_v27 = vpop.permute.xlu1 %616 }
  0x92   : > { %963 = vmatmul.mubr.msk.bf16.vlgmr.msra.gmra.mrb[4].mxu0 %vm214_vm2, %v914_v18  ;;  %981 = vmatmul.mubr.msk.bf16.vlgmr.msra.gmra.mrb[8].mxu1 %vm214_vm2, %v920_v19  ;;  %v571_v22 = vsel %vm218_vm1, %v566_v21, 0  ;;  %v622_v29 = vsel %vm218_vm1, %v617_v27, 0 }
  0x93   : > { %973 = vmatpush3.bf16.msra.mxu0 %v418_v20  ;;  %974 = vmatprep.mubr.msk.bf16.mxu0 %vm1041_vm0, %v1040_v0 }
  0x94   : > { %984 = vmatprep.subr.bf16.mxu0 %v1040_v0  ;;  %991 = vmatpush3.bf16.msra.mxu1 %v571_v22 }
  0x95   : > { %992 = vmatprep.mubr.msk.bf16.mxu1 %vm1041_vm0, %v1040_v0 }
  0x9a   : > { %975 = vmatmul.mubr.msk.bf16.vlgmr.msra.gmra.mrb[8].mxu0 %vm214_vm2, %v918_v24  ;;  %993 = vmatmul.mubr.msk.bf16.vlgmr.msra.gmra.mrb[12].mxu1 %vm214_vm2, %v924_v25 }
  0x9b   : > { %985 = vmatpush3.bf16.msra.mxu0 %v520_v26  ;;  %986 = vmatprep.mubr.msk.bf16.mxu0 %vm1041_vm0, %v1040_v0 }
  0x9c   : > { %996 = vmatprep.subr.bf16.mxu0 %v1040_v0 }
  0xa2   : > { %987 = vmatmul.mubr.msk.bf16.vlgmr.msra.gmra.mrb[12].mxu0 %vm214_vm2, %v922_v28  ;;  %v669_v7 = vpop.permute.xlu0 %668 }
  0xa3   : > { %997 = vmatpush3.bf16.msra.mxu0 %v622_v29  ;;  %998 = vmatprep.mubr.msk.bf16.mxu0 %vm1041_vm0, %v1040_v0 }
  0xaa   : > { %999 = vmatmul.mubr.msk.bf16.vlgmr.msra.gmra.mrb[16].mxu0 %vm214_vm2, %v926_v30 }
  0xe8   : > { %v302_v31 = vpop.f32.mrb[0].mxu1 }
  0xe9   : > { %v958_v32 = vpop.f32.mrb[1].mxu1 }
  0xea   : > { %v305_v33 = vpop.f32.mrb[2].mxu1 }
  0xeb   : > { %v959_v34 = vpop.f32.mrb[3].mxu1 }
 0x15d   : > { %v256_v35 = vpop.f32.mrb[0].mxu0  ;;  %v403_v36 = vpop.f32.mrb[4].mxu1 }
 0x15e   : > { %v952_v37 = vpop.f32.mrb[1].mxu0  ;;  %v303_v38 = vadd.f32 %v302_v31, %v256_v35  ;;  %v970_v39 = vpop.f32.mrb[5].mxu1 }
 0x15f   : > { %v259_v40 = vpop.f32.mrb[2].mxu0  ;;  %v406_v41 = vpop.f32.mrb[6].mxu1 }
 0x160   : > { %v953_v42 = vpop.f32.mrb[3].mxu0  ;;  %v971_v43 = vpop.f32.mrb[7].mxu1 }
 0x165   : > { %v352_v44 = vpop.f32.mrb[4].mxu0  ;;  %v505_v45 = vpop.f32.mrb[8].mxu1 }
 0x166   : > { %v358_v46 = vadd.f32 %v352_v44, %v303_v38  ;;  %v964_v47 = vpop.f32.mrb[5].mxu0  ;;  %v982_v48 = vpop.f32.mrb[9].mxu1 }
 0x167   : > { %v355_v49 = vpop.f32.mrb[6].mxu0  ;;  %v508_v50 = vpop.f32.mrb[10].mxu1 }
 0x168   : > { %v409_v51 = vadd.f32 %v403_v36, %v358_v46  ;;  %v965_v52 = vpop.f32.mrb[7].mxu0  ;;  %v983_v53 = vpop.f32.mrb[11].mxu1 }
 0x16d   : > { %v454_v54 = vpop.f32.mrb[8].mxu0  ;;  %v607_v55 = vpop.f32.mrb[12].mxu1 }
 0x16e   : > { %v460_v56 = vadd.f32 %v454_v54, %v409_v51  ;;  %v976_v57 = vpop.f32.mrb[9].mxu0  ;;  %v994_v58 = vpop.f32.mrb[13].mxu1 }
 0x16f   : > { %v457_v59 = vpop.f32.mrb[10].mxu0  ;;  %v610_v60 = vpop.f32.mrb[14].mxu1 }
 0x170   : > { %v511_v61 = vadd.f32 %v505_v45, %v460_v56  ;;  %v977_v62 = vpop.f32.mrb[11].mxu0  ;;  %v995_v63 = vpop.f32.mrb[15].mxu1 }
 0x175   : > { %v556_v0 = vpop.f32.mrb[12].mxu0 }
 0x176   : > { %v562_v1 = vadd.f32 %v556_v0, %v511_v61  ;;  %v988_v2 = vpop.f32.mrb[13].mxu0 }
 0x177   : > { %v559_v3 = vpop.f32.mrb[14].mxu0 }
 0x178   : > { %v613_v4 = vadd.f32 %v607_v55, %v562_v1  ;;  %v989_v5 = vpop.f32.mrb[15].mxu0 }
 0x17d   : > { %v658_v6 = vpop.f32.mrb[16].mxu0 }
 0x17e   : > { %v664_v8 = vadd.f32 %v658_v6, %v613_v4  ;;  %v1000_v9 = vpop.f32.mrb[17].mxu0 }
 0x17f   : > { %v661_v10 = vpop.f32.mrb[18].mxu0 }
 0x180   : > { %v1186_v11 = vadd.f32 %v669_v7, %v664_v8  ;;  %v1001_v12 = vpop.f32.mrb[19].mxu0 }
 0x182   : > { %688 = vrot.lane.b32.xlu0 %v1186_v11, %s1043_s24  ;;  %683 = vrot.lane.b32.xlu1 %v1186_v11, %s1044_s25  ;;  %672 = vst.msk [vmem:[%s1184_s6] sm:$0xff] %vm214_vm2, %v1186_v11  ;;  %s1056_s25 = smov 68   ;;  %v677_v13 = vmul.f32 %v1186_v11, %v1186_v11  ;;  %v673_v14 = vsel %vm214_vm2, %v1186_v11, 0.0 }
 0x184   : > { %v678_v15 = vsel %vm214_vm2, %v677_v13, 0.0 }
 0x186   : > { %708 = vrot.lane.b32.xlu0 %v1186_v11, %s1047_s28  ;;  %703 = vrot.lane.b32.xlu1 %v1186_v11, %s1051_s7 }
 0x18a   : > { %727 = vrot.lane.b32.xlu0 %v1186_v11, %s1052_s8  ;;  %722 = vrot.lane.b32.xlu1 %v1186_v11, %s1053_s9 }
 0x18e   : > { %746 = vrot.lane.b32.xlu0 %v1186_v11, %s1054_s10  ;;  %741 = vrot.lane.b32.xlu1 %v1186_v11, %s1055_s11 }
 0x192   : > { %781 = vrot.lane.b32.xlu0 %v1186_v11, %s1056_s25  ;;  %762 = vrot.lane.b32.xlu1 %v1186_v11, %s1057_s12 }
 0x196   : > { %800 = vrot.lane.b32.xlu0 %v1186_v11, %s1058_s13 }
 0x19a   : > { %696 = vrot.lane.b32.xlu0 %v677_v13, %s1043_s24  ;;  %s1059_s24 = smov 114  }
 0x19e   : > { %715 = vrot.lane.b32.xlu0 %v677_v13, %s1047_s28 }
 0x1a2   : > { %734 = vrot.lane.b32.xlu0 %v677_v13, %s1052_s8 }
 0x1a6   : > { %753 = vrot.lane.b32.xlu0 %v677_v13, %s1054_s10 }
 0x1aa   : > { %769 = vrot.lane.b32.xlu0 %v677_v13, %s1057_s12 }
 0x1ae   : > { %788 = vrot.lane.b32.xlu0 %v677_v13, %s1056_s25 }
 0x1b2   : > { %807 = vrot.lane.b32.xlu0 %v677_v13, %s1058_s13 }
 0x1b6   : > { %776 = vrot.lane.b32.xlu0 %v1186_v11, %s1046_s27  ;;  %674 = vadd.xlane.f32.xlu1 %v673_v14 }
 0x1d5   : > { %679 = vadd.xlane.f32.xlu0 %v678_v15 }
 0x1f4   : > { %v689_v16 = vpop.permute.xlu0 %688  ;;  %v684_v17 = vpop.permute.xlu1 %683 }
 0x1f5   : > { %687 = vst.msk [vmem:[%s1184_s6] sm:$0xff] %vm686_vm3, %v684_v17  ;;  %v691_v18 = vsel %vm214_vm2, %v689_v16, 0.0 }
 0x1f6   : > { %692 = vadd.xlane.f32.xlu1 %v691_v18 }
 0x1f8   : > { %v709_v19 = vpop.permute.xlu0 %708  ;;  %v704_v20 = vpop.permute.xlu1 %703 }
 0x1f9   : > { %707 = vst.msk [vmem:[%s1184_s6] sm:$0xff] %vm706_vm4, %v704_v20  ;;  %v711_v21 = vsel %vm214_vm2, %v709_v19, 0.0 }
 0x1fa   : > { %712 = vadd.xlane.f32.xlu1 %v711_v21 }
 0x1fc   : > { %v728_v22 = vpop.permute.xlu0 %727  ;;  %v723_v23 = vpop.permute.xlu1 %722 }
 0x1fd   : > { %726 = vst.msk [vmem:[%s1184_s6] sm:$0xff] %vm725_vm5, %v723_v23  ;;  %v730_v24 = vsel %vm214_vm2, %v728_v22, 0.0 }
 0x1fe   : > { %731 = vadd.xlane.f32.xlu1 %v730_v24 }
 0x200   : > { %v747_v25 = vpop.permute.xlu0 %746  ;;  %v742_v26 = vpop.permute.xlu1 %741 }
 0x201   : > { %745 = vst.msk [vmem:[%s1184_s6] sm:$0xff] %vm744_vm6, %v742_v26  ;;  %v749_v27 = vsel %vm214_vm2, %v747_v25, 0.0 }
 0x202   : > { %750 = vadd.xlane.f32.xlu1 %v749_v27  ;;  %761 = vst.msk [vmem:[%s1184_s6] sm:$0xff] %vm760_vm7, %v689_v16 }
 0x204   : > { %v782_v28 = vpop.permute.xlu0 %781  ;;  %v763_v29 = vpop.permute.xlu1 %762 }
 0x205   : > { %v765_v30 = vsel %vm214_vm2, %v763_v29, 0.0  ;;  %v784_v32 = vsel %vm214_vm2, %v782_v28, 0.0 }
 0x206   : > { %766 = vadd.xlane.f32.xlu1 %v765_v30 }
 0x208   : > { %v801_v31 = vpop.permute.xlu0 %800 }
 0x209   : > { %v803_v45 = vsel %vm214_vm2, %v801_v31, 0.0 }
 0x20a   : > { %785 = vadd.xlane.f32.xlu1 %v784_v32 }
 0x20c   : > { %v697_v33 = vpop.permute.xlu0 %696 }
 0x20d   : > { %v699_v34 = vsel %vm214_vm2, %v697_v33, 0.0 }
 0x20e   : > { %700 = vadd.xlane.f32.xlu0 %v699_v34 }
 0x210   : > { %v716_v35 = vpop.permute.xlu0 %715 }
 0x211   : > { %v718_v36 = vsel %vm214_vm2, %v716_v35, 0.0 }
 0x212   : > { %719 = vadd.xlane.f32.xlu0 %v718_v36 }
 0x214   : > { %v735_v37 = vpop.permute.xlu0 %734 }
 0x215   : > { %v737_v38 = vsel %vm214_vm2, %v735_v37, 0.0 }
 0x216   : > { %738 = vadd.xlane.f32.xlu0 %v737_v38 }
 0x218   : > { %v754_v39 = vpop.permute.xlu0 %753 }
 0x219   : > { %v756_v40 = vsel %vm214_vm2, %v754_v39, 0.0 }
 0x21a   : > { %757 = vadd.xlane.f32.xlu0 %v756_v40 }
 0x21c   : > { %v770_v41 = vpop.permute.xlu0 %769 }
 0x21d   : > { %v772_v42 = vsel %vm214_vm2, %v770_v41, 0.0 }
 0x21e   : > { %773 = vadd.xlane.f32.xlu1 %v772_v42 }
 0x220   : > { %v789_v43 = vpop.permute.xlu0 %788 }
 0x221   : > { %v791_v44 = vsel %vm214_vm2, %v789_v43, 0.0 }
 0x222   : > { %792 = vadd.xlane.f32.xlu0 %v791_v44  ;;  %804 = vadd.xlane.f32.xlu1 %v803_v45 }
 0x224   : > { %v808_v46 = vpop.permute.xlu0 %807 }
 0x225   : > { %v810_v47 = vsel %vm214_vm2, %v808_v46, 0.0 }
 0x226   : > { %811 = vadd.xlane.f32.xlu1 %v810_v47 }
 0x228   : > { %v777_v48 = vpop.permute.xlu0 %776 }
 0x229   : > { %780 = vst.msk [vmem:[%s1184_s6] sm:$0xff] %vm779_vm8, %v777_v48 }
 0x237   : > { %795 = vrot.lane.b32.xlu1 %v1186_v11, %s1059_s24 }
 0x243   : > { %v675_v49 = vpop.xlane.xlu1 %674 }
 0x262   : > { %v680_v53 = vpop.xlane.xlu0 %679 }
 0x283   : > { %v693_v50 = vpop.xlane.xlu1 %692 }
 0x284   : > { %v694_v58 = vadd.f32 %v693_v50, %v675_v49 }
 0x287   : > { %v713_v51 = vpop.xlane.xlu1 %712 }
 0x288   : > { %v714_v60 = vadd.f32 %v713_v51, %v694_v58 }
 0x28b   : > { %v732_v52 = vpop.xlane.xlu1 %731 }
 0x28c   : > { %v733_v62 = vadd.f32 %v732_v52, %v714_v60 }
 0x28f   : > { %v751_v54 = vpop.xlane.xlu1 %750 }
 0x290   : > { %v752_v0 = vadd.f32 %v751_v54, %v733_v62 }
 0x293   : > { %v767_v57 = vpop.xlane.xlu1 %766 }
 0x294   : > { %v768_v4 = vadd.f32 %v767_v57, %v752_v0 }
 0x297   : > { %v786_v61 = vpop.xlane.xlu1 %785 }
 0x298   : > { %v787_v6 = vadd.f32 %v786_v61, %v768_v4 }
 0x29b   : > { %v701_v55 = vpop.xlane.xlu0 %700 }
 0x29c   : > { %v702_v63 = vadd.f32 %v701_v55, %v680_v53 }
 0x29f   : > { %v720_v56 = vpop.xlane.xlu0 %719 }
 0x2a0   : > { %v721_v1 = vadd.f32 %v720_v56, %v702_v63 }
 0x2a3   : > { %v739_v59 = vpop.xlane.xlu0 %738 }
 0x2a4   : > { %v740_v5 = vadd.f32 %v739_v59, %v721_v1 }
 0x2a7   : > { %v758_v2 = vpop.xlane.xlu0 %757 }
 0x2a8   : > { %v759_v7 = vadd.f32 %v758_v2, %v740_v5 }
 0x2ab   : > { %v774_v3 = vpop.xlane.xlu1 %773 }
 0x2ac   : > { %v775_v10 = vadd.f32 %v774_v3, %v759_v7 }
 0x2af   : > { %v793_v8 = vpop.xlane.xlu0 %792  ;;  %v805_v9 = vpop.xlane.xlu1 %804 }
 0x2b0   : > { %v806_v11 = vadd.f32 %v805_v9, %v787_v6  ;;  %v794_v12 = vadd.f32 %v793_v8, %v775_v10 }
 0x2b2   : > { %815 = vst.msk [vmem:[%s203_s14] sm:$0xff] %vm814_vm9, %v806_v11 }
 0x2b3   : > { %v812_v13 = vpop.xlane.xlu1 %811 }
 0x2b4   : > { %v813_v14 = vadd.f32 %v812_v13, %v794_v12 }
 0x2b6   : > { %817 = vst.msk [vmem:[%s203_s14] sm:$0xff] %vm816_vm10, %v813_v14 }
 0x2b7   : > { %v796_v15 = vpop.permute.xlu1 %795 }
 0x2b8   : > { %799 = vst.msk [vmem:[%s1184_s6] sm:$0xff] %vm798_vm11, %v796_v15 }
 0x2b9 PF: > { %s15_s15 = sadd.s32 1, %s1038_s15  }
 0x2ba   : > { %p12_p4 = scmp.ge.s32.totalorder %s15_s15, 4  }
 0x2bc   :  { %14 = sbr.rel (!%p12_p4) target bundleno = 1 (0x1), region = 82 }

// kernel: resid_block.5
= control target key start
LH: loop header
LB: loop body
LE: loop exit
PB: predicated region body
PF: predicated region fallthrough
CT: control target
= control target key end

     0   :  { %s452_s18 = smov 0   ;;  %s485_s0 = inlined_call_operand.vmem [shape: f32[2,8,64], index: 0, kind: input, shape index: {}]   ;;  %s486_s1 = inlined_call_operand.vmem [shape: bf16[2,4,64], index: 1, kind: input, shape index: {}]   ;;  %s487_s2 = inlined_call_operand.vmem [shape: bf16[8,4], index: 2, kind: input, shape index: {}]   ;;  %s488_s3 = inlined_call_operand.vmem [shape: f32[8,1], index: 3, kind: input, shape index: {}]   ;;  %s489_s4 = inlined_call_operand.vmem [shape: f32[8,2], index: 4, kind: input, shape index: {}]   ;;  %s490_s5 = inlined_call_operand.vmem [shape: f32[2,8,64], index: 5, kind: output, shape index: {}]  }
   0x1 LB: > { %s376_s19 = sadd.s32 4294967295, %s416_s18   ;;  %p380_p0 = scmp.ge.s32.totalorder %s416_s18, 1  ;;  %s416_s18 = sphi %s452_s18, %s15_s18  }
   0x2   : > { %p195_p1 = scmp.lt.s32.totalorder %s416_s18, 3 }
   0x4   : > { %p196_p2 = pnand %p380_p0, %p195_p1 }
   0x5   : > { %p225_p3 = scmp.lt.s32.totalorder (!%p196_p2), %s376_s19, 1  ;;  %v418_v0 = vmov (!%p196_p2), 0.0   ;;  %vm419_vm0 = vmmov (!%p196_p2), 0   ;;  %v238_v1 = vld [vmem:[%s489_s4] sm:$0xff] (!%p196_p2)  ;;  %v420_v2 = vmov (!%p196_p2), 0   ;;  %v421_v3 = vmov (!%p196_p2), 1  }
   0x6   : > { %199 = sbr.rel (%p196_p2) target bundleno = 240 (0xf0), region = 40  ;;  %389 = vmatprep.subr.bf16.mxu0 (!%p196_p2), %v418_v0  ;;  %391 = vmatprep.mubr.msk.bf16.mxu0 (!%p196_p2), %vm419_vm0, %v418_v0  ;;  %vm251_vm1 = vcmask (!%p196_p2), 1041408   ;;  %v241_v4 = vld [vmem:[%s488_s3] sm:$0xff] (!%p196_p2)  ;;  %vm247_vm2 = vcmask (!%p196_p2), 31744   ;;  %vm309_vm3 = vcmask (!%p196_p2), 523264  }
   0x7   : > { %407 = vset.pattern.permute.xlu0 (!%p196_p2), %v420_v2  ;;  %408 = vset.pattern.permute.xlu1 (!%p196_p2), %v421_v3  ;;  %v239_v7 = vld [vmem:[%s487_s2] sm:$0xf] (!%p196_p2) }
   0x8   : > { %298 = vperm.xlu0 (!%p196_p2), %407, %v238_v1   ;;  %303 = vperm.xlu1 (!%p196_p2), %408, %v238_v1  }
   0xc   : > { %244 = vperm.xlu0 (!%p196_p2), %407, %v241_v4  }
   0xd   : > { %s492_s19 = smov (!%p225_p3, %s376_s19), 1 }
   0xe   : > { %s382_s22 = sshll.u32 %s492_s19, 1  ;;  %s381_s30 = sshll.u32 %s492_s19, 3 }
   0xf   : > { %s232_s27 = scalar_lea.vmem %s486_s1, %s382_s22  ;;  %s228_s8 = scalar_lea.vmem %s485_s0, %s381_s30 }
  0x10   : > { %v240_v5 = vld [vmem:[%s232_s27] sm:$0x3]  ;;  %409 = vset.pattern.permute.xlu0 %v421_v3  ;;  %s236_s11 = scalar_lea.vmem %s490_s5, %s381_s30 }
  0x11   : > { %v253_v6 = vsel %vm251_vm1, %v240_v5, 0  ;;  %v295_v9 = vld [vmem:[%s228_s8] sm:$0xff] }
  0x12   : > { %390 = vmatpush3.bf16.msra.mxu0 %v253_v6 }
  0x15   : > { %392 = vmatmul.mubr.msk.bf16.vlgmr.msra.gmra.mrb[0].mxu0 %vm247_vm2, %v239_v7 }
  0x87   : > { %v299_v8 = vpop.permute.xlu0 %298  ;;  %v304_v11 = vpop.permute.xlu1 %303 }
  0x88   : > { %v301_v10 = vmul.f32 %v299_v8, %v295_v9 }
  0x8a   : > { %v306_v14 = vadd.f32 %v304_v11, %v301_v10 }
  0x8b   : > { %v245_v12 = vpop.permute.xlu0 %244 }
  0xe8   : > { %v289_v13 = vpop.f32.mrb[0].mxu0 }
  0xe9   : > { %v290_v15 = vadd.f32 %v289_v13, %v245_v12  ;;  %v393_v16 = vpop.f32.mrb[1].mxu0 }
  0xea   : > { %v292_v17 = vpop.f32.mrb[2].mxu0 }
  0xeb   : > { %v307_v18 = vadd.f32 %v306_v14, %v290_v15  ;;  %v394_v19 = vpop.f32.mrb[3].mxu0 }
  0xed   : > { %v308_v20 = vmax.f32 %v307_v18, 0.0 }
  0xef   : > { %310 = vst.msk [vmem:[%s236_s11] sm:$0xff] %vm309_vm3, %v308_v20 }
  0xf0 PF: > { %s15_s18 = sadd.s32 1, %s416_s18  }
  0xf1   : > { %p12_p4 = scmp.ge.s32.totalorder %s15_s18, 4  }
  0xf3   :  { %14 = sbr.rel (!%p12_p4) target bundleno = 1 (0x1), region = 73 }

</bundles_post_ra>
